<compile_context>
chip_gen: v5e
topology: v5e:2x2
jax: 0.10.0
libtpu: 0.0.40
codegen_flags: <defaults>
</compile_context>

<pallas_src>
import functools
import math

import jax
import jax.numpy as jnp
from jax.experimental import pallas as pl
from jax.experimental.pallas import tpu as pltpu


def _attn_kernel(qkv_ref, o_ref, *, scale_sq, compute_dtype, exp_in_compute_dtype,
                 exact_recip):
    # qkv_ref: (1, 3, G, C, T) block; o_ref: (1, G, C, T) block.
    q = qkv_ref[0, 0].astype(compute_dtype)            # (G, C, T)
    k = qkv_ref[0, 1].astype(compute_dtype)
    v = qkv_ref[0, 2].astype(compute_dtype)

    # Fold both 1/ch**0.25 factors into q once (C*T multiplies instead of T*T).
    q = q * jnp.asarray(scale_sq, compute_dtype)

    # wt[g, s, t] = sum_c k[g, c, s] * q[g, c, t].
    # Explicit dot_general (contract the sublane dim, batch over heads): the MXU
    # consumes the transposed-LHS form directly (no per-head k transpose copy),
    # and keeping s on sublanes / t on lanes makes the second matmul canonical
    # and the output store lane-dense.
    wt = jax.lax.dot_general(k, q, (((1,), (1,)), ((0,), (0,))),
                             preferred_element_type=jnp.float32)

    # Numerically stable softmax over s (axis 1); max / row-sum stats in f32.
    wt = wt - jnp.max(wt, axis=1, keepdims=True)
    if exp_in_compute_dtype:
        # bf16 EUP path (v6e/v7x): exp straight into the matmul dtype, so there
        # is no second full (T, T) cast pass; row sums accumulate in f32.
        p = jnp.exp(wt.astype(compute_dtype))
        l = jnp.sum(p, axis=1, keepdims=True, dtype=jnp.float32)
    else:
        p32 = jnp.exp(wt)                               # f32 EUP (v5e / exact path)
        l = jnp.sum(p32, axis=1, keepdims=True)
        p = p32.astype(compute_dtype)

    # out[g, c, t] = sum_s v[g, c, s] * p[g, s, t]  -- canonical MXU matmul form.
    acc = jax.lax.dot_general(v, p, (((2,), (1,)), ((0,), (0,))),
                              preferred_element_type=jnp.float32)

    # Deferred normalization: one (G, C, T)-sized multiply.  Approx reciprocal
    # uses the otherwise-idle EUP slot; exact division on the f32 parity path.
    inv_l = pl.reciprocal(l, approx=not exact_recip)
    o_ref[0] = (acc * inv_l).astype(o_ref.dtype)


def _tpu_generation():
    try:
        kind = jax.devices()[0].device_kind.lower()
    except Exception:
        return 6
    for gen in (7, 6, 5, 4, 3):
        if f"v{gen}" in kind:
            return gen
    return 6


def _physical_vmem_bytes():
    try:
        return int(pltpu.get_tpu_info().vmem_capacity_bytes)
    except Exception:
        return (64 << 20) if _tpu_generation() >= 7 else (128 << 20)


def _per_head_vmem_bytes(t, ch, in_itemsize, c_itemsize, exp_in_compute_dtype,
                         input_buffers):
    # Pipelined input blocks + double-buffered output blocks (per head).
    io = input_buffers * 3 * ch * t * in_itemsize + 2 * ch * t * in_itemsize
    # Operand copies when the matmul dtype differs from the input dtype.
    cast = 3 * ch * t * c_itemsize if c_itemsize != in_itemsize else 0
    # f32 logits + shifted logits (conservative: assume not in-place).
    logits = 2 * t * t * 4
    # Probabilities in the matmul dtype (+ the f32 exp output on the v5e path).
    probs = t * t * c_itemsize
    if not exp_in_compute_dtype and c_itemsize != 4:
        probs += t * t * 4
    # f32 accumulator + the (acc * inv_l) temporary.
    acc = 2 * ch * t * 4
    return int((io + cast + logits + probs + acc) * 1.15)   # ~15% Mosaic slack


def _largest_divisor_under(n, cap):
    g = max(1, min(n, cap))
    while n % g:
        g -= 1
    return g


def qkv_attention(qkv, n_heads, *, compute_dtype=None, heads_per_step=None,
                  vmem_budget_bytes=None, input_buffering=2):
    """Pallas implementation of QKVAttention.forward.

    :param qkv: [N, 3*H*C, T] array of Qs, Ks and Vs (channel order (3, H, C)).
    :param compute_dtype: matmul operand dtype.  Defaults to bf16 for f32 inputs
        (native MXU path, ~1e-2-level agreement with the f32 module); pass
        jnp.float32 for near-exact parity.
    :param input_buffering: input-pipeline depth (sweepable; 2 = default).
    :return: [N, H*C, T] array after attention.
    """
    N, width, T = qkv.shape
    assert width % (3 * n_heads) == 0
    ch = width // (3 * n_heads)
    scale_sq = 1.0 / math.sqrt(ch)           # == (1/ch**0.25)**2, folded into q once

    in_dtype = jnp.dtype(qkv.dtype)
    if compute_dtype is None:
        compute_dtype = jnp.dtype(jnp.bfloat16) if in_dtype == jnp.float32 else in_dtype
    else:
        compute_dtype = jnp.dtype(compute_dtype)

    gen = _tpu_generation()
    # bf16 exp only where the EUP has a bf16 path (v6e/v7x); keep f32 exp on v5e.
    exp_in_compute_dtype = (compute_dtype == jnp.dtype(jnp.bfloat16)) and gen >= 6

    # Generation-aware VMEM budgeting (v7x: 64 MiB physical; v5e/v6e: 128 MiB).
    phys_vmem = _physical_vmem_bytes()
    vmem_cap = min(int(phys_vmem * 0.6), 64 << 20)      # ceiling for the scoped limit
    if vmem_budget_bytes is None:
        vmem_budget_bytes = min(40 << 20, (vmem_cap * 2) // 3)

    per_head = _per_head_vmem_bytes(T, ch, in_dtype.itemsize, compute_dtype.itemsize,
                                    exp_in_compute_dtype, input_buffering)
    if heads_per_step is None:
        g = _largest_divisor_under(n_heads, max(1, vmem_budget_bytes // per_head))
        # Keep enough grid steps for megacore sharding (2 TCs on v7x) and for
        # DMA/compute overlap before maxing out the per-step block.
        min_steps = min(4, N * n_heads)
        while g > 1 and N * (n_heads // g) < min_steps:
            g = _largest_divisor_under(n_heads, g - 1)
    else:
        g = heads_per_step
        assert n_heads % g == 0

    # Raise the scoped VMEM limit only when the estimate exceeds the smallest
    # default (16 MiB on v5e); never above ~60% of this chip's physical VMEM.
    vmem_needed = g * per_head + (2 << 20)
    vmem_limit = min(vmem_needed, vmem_cap) if vmem_needed > (16 << 20) else None

    # Free, layout-compatible reshape: no HBM passes in the wrapper.
    qkv5 = qkv.reshape(N, 3, n_heads, ch, T)

    grid = (N, n_heads // g)
    in_spec_kwargs = {}
    if input_buffering != 2:
        in_spec_kwargs["pipeline_mode"] = pl.Buffered(input_buffering)
    in_spec = pl.BlockSpec((1, 3, g, ch, T), lambda n, h: (n, 0, h, 0, 0),
                           **in_spec_kwargs)
    out_spec = pl.BlockSpec((1, g, ch, T), lambda n, h: (n, h, 0, 0))

    out = pl.pallas_call(
        functools.partial(
            _attn_kernel,
            scale_sq=scale_sq,
            compute_dtype=compute_dtype,
            exp_in_compute_dtype=exp_in_compute_dtype,
            exact_recip=(compute_dtype == jnp.dtype(jnp.float32)),
        ),
        out_shape=jax.ShapeDtypeStruct((N, n_heads, ch, T), qkv.dtype),
        grid_spec=pltpu.PrefetchScalarGridSpec(
            num_scalar_prefetch=0,
            grid=grid,
            in_specs=[in_spec],
            out_specs=out_spec,
        ),
        compiler_params=pltpu.CompilerParams(
            dimension_semantics=("parallel", "parallel"),
            vmem_limit_bytes=vmem_limit,
        ),
    )(qkv5)                                             # (N, H, C, T)

    # Free reshape back to the module's output layout.
    return out.reshape(N, n_heads * ch, T)


if __name__ == "__main__":
    # Small but TPU-friendly shapes consistent with the module:
    # N=2, H=2, C=64 per head, T=256 (e.g. a flattened 16x16 feature map).
    n_heads = 2
    N, ch, T = 2, 64, 256
    width = 3 * n_heads * ch

    key = jax.random.PRNGKey(0)
    qkv = jax.random.normal(key, (N, width, T), dtype=jnp.float32)

    # Pure-JAX reference (same math as the PyTorch forward).
    scale = 1.0 / math.sqrt(math.sqrt(ch))
    q, k, v = jnp.split(qkv, 3, axis=1)
    qh = (q * scale).reshape(N * n_heads, ch, T)
    kh = (k * scale).reshape(N * n_heads, ch, T)
    vh = v.reshape(N * n_heads, ch, T)
    w = jnp.einsum("bct,bcs->bts", qh, kh)
    w = jax.nn.softmax(w.astype(jnp.float32), axis=-1).astype(qkv.dtype)
    ref = jnp.einsum("bts,bcs->bct", w, vh).reshape(N, -1, T)

    # Exact-parity path: f32 matmul operands, tight tolerance.
    out_exact = jax.block_until_ready(
        qkv_attention(qkv, n_heads, compute_dtype=jnp.float32))
    assert out_exact.shape == (N, n_heads * ch, T)
    err_exact = float(jnp.max(jnp.abs(out_exact - ref)))
    assert jnp.allclose(out_exact, ref, atol=2e-3, rtol=2e-3), \
        f"max abs err (f32 path) = {err_exact}"

    # Default fast path: bf16 MXU operands with f32 accumulation / statistics.
    out_fast = jax.block_until_ready(qkv_attention(qkv, n_heads))
    assert out_fast.shape == (N, n_heads * ch, T)
    err_fast = float(jnp.max(jnp.abs(out_fast - ref)))
    assert jnp.allclose(out_fast, ref, atol=3e-2, rtol=3e-2), \
        f"max abs err (bf16 path) = {err_fast}"

    print("KERNEL_OK")
</pallas_src>

<mosaic_0001>
module attributes {stable_mosaic.version = 11 : i64} {
  func.func @_attn_kernel(%arg0: i32, %arg1: i32, %arg2: memref<1x3x1x64x256xf32, #tpu.memory_space<vmem>>, %arg3: memref<1x1x64x256xf32, #tpu.memory_space<vmem>>) attributes {dimension_semantics = [#tpu.dimension_semantics<parallel>, #tpu.dimension_semantics<parallel>], iteration_bounds = array<i64: 2, 2>, scalar_prefetch = 0 : i64, scratch_operands = 0 : i64, tpu.core_type = #tpu.core_type<tc>, window_params = [{transform_indices = @transform_0, window_bounds = array<i64: 1, 3, 1, 64, 256>}, {transform_indices = @transform_1, window_bounds = array<i64: 1, 1, 64, 256>}]} {
    %c0 = arith.constant 0 : index
    %c0_0 = arith.constant 0 : index
    %c0_1 = arith.constant 0 : index
    %c0_2 = arith.constant 0 : index
    %c0_3 = arith.constant 0 : index
    %0 = vector.load %arg2[%c0, %c0_0, %c0_1, %c0_2, %c0_3] : memref<1x3x1x64x256xf32, #tpu.memory_space<vmem>>, vector<1x1x1x64x256xf32>
    %1 = vector.shape_cast %0 : vector<1x1x1x64x256xf32> to vector<1x64x256xf32>
    %c0_4 = arith.constant 0 : index
    %c1 = arith.constant 1 : index
    %c0_5 = arith.constant 0 : index
    %c0_6 = arith.constant 0 : index
    %c0_7 = arith.constant 0 : index
    %2 = vector.load %arg2[%c0_4, %c1, %c0_5, %c0_6, %c0_7] : memref<1x3x1x64x256xf32, #tpu.memory_space<vmem>>, vector<1x1x1x64x256xf32>
    %3 = vector.shape_cast %2 : vector<1x1x1x64x256xf32> to vector<1x64x256xf32>
    %c0_8 = arith.constant 0 : index
    %c2 = arith.constant 2 : index
    %c0_9 = arith.constant 0 : index
    %c0_10 = arith.constant 0 : index
    %c0_11 = arith.constant 0 : index
    %4 = vector.load %arg2[%c0_8, %c2, %c0_9, %c0_10, %c0_11] : memref<1x3x1x64x256xf32, #tpu.memory_space<vmem>>, vector<1x1x1x64x256xf32>
    %5 = vector.shape_cast %4 : vector<1x1x1x64x256xf32> to vector<1x64x256xf32>
    %cst = arith.constant 1.250000e-01 : f32
    %6 = vector.broadcast %cst : f32 to vector<1x64x256xf32>
    %7 = arith.mulf %1, %6 : vector<1x64x256xf32>
    %cst_12 = arith.constant dense<0.000000e+00> : vector<1x256x256xf32>
    %8 = tpu.matmul %3, %7, %cst_12 {dimension_numbers = #tpu.dot_dimension_numbers<[1], [1], [2], [2], [0, 0, 0, 2, 1, 2], [0], [0]>} : vector<1x64x256xf32>, vector<1x64x256xf32>, vector<1x256x256xf32> -> vector<1x256x256xf32>
    %cst_13 = arith.constant dense<0xFF800000> : vector<1x256xf32>
    %9 = vector.multi_reduction <maximumf>, %8, %cst_13 [1] : vector<1x256x256xf32> to vector<1x256xf32>
    %10 = vector.shape_cast %9 : vector<1x256xf32> to vector<1x1x256xf32>
    %11 = vector.broadcast %10 : vector<1x1x256xf32> to vector<1x256x256xf32>
    %12 = arith.subf %8, %11 : vector<1x256x256xf32>
    %13 = math.exp %12 : vector<1x256x256xf32>
    %cst_14 = arith.constant dense<0.000000e+00> : vector<1x256xf32>
    %14 = vector.multi_reduction <add>, %13, %cst_14 [1] : vector<1x256x256xf32> to vector<1x256xf32>
    %15 = vector.shape_cast %14 : vector<1x256xf32> to vector<1x1x256xf32>
    %cst_15 = arith.constant dense<0.000000e+00> : vector<1x64x256xf32>
    %16 = tpu.matmul %5, %13, %cst_15 {dimension_numbers = #tpu.dot_dimension_numbers<[2], [1], [1], [2], [0, 0, 0, 1, 1, 2], [0], [0]>} : vector<1x64x256xf32>, vector<1x256x256xf32>, vector<1x64x256xf32> -> vector<1x64x256xf32>
    %17 = tpu.reciprocal %15 : vector<1x1x256xf32> -> vector<1x1x256xf32>
    %18 = vector.broadcast %17 : vector<1x1x256xf32> to vector<1x64x256xf32>
    %19 = arith.mulf %16, %18 : vector<1x64x256xf32>
    %c0_16 = arith.constant 0 : index
    %c0_17 = arith.constant 0 : index
    %c0_18 = arith.constant 0 : index
    %c0_19 = arith.constant 0 : index
    %20 = vector.load %arg3[%c0_16, %c0_17, %c0_18, %c0_19] : memref<1x1x64x256xf32, #tpu.memory_space<vmem>>, vector<1x1x64x256xf32>
    %21 = vector.shape_cast %20 : vector<1x1x64x256xf32> to vector<1x64x256xf32>
    %22 = vector.shape_cast %19 : vector<1x64x256xf32> to vector<1x1x64x256xf32>
    tpu.vector_store %arg3[%c0_16, %c0_17, %c0_18, %c0_19], %22 {strides = array<i32>} : memref<1x1x64x256xf32, #tpu.memory_space<vmem>>, vector<1x1x64x256xf32>,
    return
  }
  func.func @transform_0(%arg0: i32, %arg1: i32) -> (i32, i32, i32, i32, i32) {
    %c0_i32 = arith.constant 0 : i32
    %c0_i32_0 = arith.constant 0 : i32
    %c0_i32_1 = arith.constant 0 : i32
    %c0_i32_2 = arith.constant 0 : i32
    return %arg0, %c0_i32, %arg1, %c0_i32_0, %c0_i32_1 : i32, i32, i32, i32, i32
  }
  func.func @transform_1(%arg0: i32, %arg1: i32) -> (i32, i32, i32, i32) {
    %c0_i32 = arith.constant 0 : i32
    %c0_i32_0 = arith.constant 0 : i32
    %c0_i32_1 = arith.constant 0 : i32
    return %arg0, %arg1, %c0_i32, %c0_i32_0 : i32, i32, i32, i32
  }
}

</mosaic_0001>

<bundles_post_ra>
// kernel: tpu_custom_call.1
= control target key start
LH: loop header
LB: loop body
LE: loop exit
PB: predicated region body
PF: predicated region fallthrough
CT: control target
= control target key end

     0   :  { %6 = vsyncpa [#allocation3], 0  ;;  %s2585_s0 = inlined_call_operand.hbm [shape: f32[2,3,2,64,256], index: 0, kind: input, shape index: {}]   ;;  %s2586_s1 = inlined_call_operand.hbm [shape: f32[2,2,64,256], index: 1, kind: output, shape index: {}]  }
   0x1   :  { %8 = vsyncpa [#allocation3 + $0x1], 0 }
   0x2   :  { %9 = vsyncpa [#allocation4], 0 }
   0x3   :  { %11 = vsyncpa [#allocation4 + $0x1], 0  ;;  %s1775_s6 = smov 0   ;;  %s1777_s7 = smov 0  }
   0x4   :  { %s1779_s8 = smov 0   ;;  %s1781_s9 = smov 0  }
   0x5   :  { %s1783_s10 = smov 0   ;;  %s1785_s11 = smov 0  }
   0x6   :  { %s1787_s12 = smov 0   ;;  %s1789_s13 = smov 0  }
   0x7 LB: > { %2605 = sst [smem:[#allocation11_spill]] %s1751_s12  ;;  %s1305_s14 = sadd.s32 4294967295, %s1755_s13   ;;  %s1755_s13 = sphi %s1789_s13, %s17_s13   ;;  %s1751_s12 = sphi %s1787_s12, %s2644_s12   ;;  %s1747_s11 = sphi %s1785_s11, %s2649_s11   ;;  %s1743_s10 = sphi %s1783_s10, %s2642_s10   ;;  %s1739_s9 = sphi %s1781_s9, %s2648_s9   ;;  %s1735_s8 = sphi %s1779_s8, %s2647_s8   ;;  %s1731_s7 = sphi %s1777_s7, %s2646_s7   ;;  %s1727_s6 = sphi %s1775_s6, %s2645_s6  }
   0x8   : > { %s1306_s15 = sadd.s32 4294967294, %s1755_s13   ;;  %s26_s16 = sadd.s32 1, %s1747_s11 }
   0x9   : > { %p27_p0 = scmp.ge.s32.totalorder %s26_s16, 2  ;;  %s29_s17 = sadd.s32 1, %s1751_s12 }
   0xa   : > { %p45_p1 = scmp.ne.s32.totalorder %s1735_s8, %s1731_s7  ;;  %p46_p2 = scmp.eq.s32.totalorder %s1755_s13, 0 }
   0xb   : > { %s2651_s16 = smov (%p27_p0, %s26_s16), 0  ;;  %s2653_s17 = smov (!%p27_p0, %s29_s17), %s1751_s12 }
   0xc   : > { %2606 = sst [smem:[#allocation12_spill]] %s2651_s16  ;;  %s34_s18 = ssub.s32 %s1747_s11, %s2651_s16 }
   0xd   : > { %p1827_p3 = por %p46_p2, %p45_p1  ;;  %p31_p4 = scmp.ge.s32.totalorder %s2653_s17, 2 }
   0xe   : > { %p51_p5 = scmp.ne.s32.totalorder %s1731_s7, %s1727_s6  ;;  %p52_p6 = scmp.eq.s32.totalorder %s1305_s14, 0 }
   0xf   : > { %p77_p7 = scmp.eq.s32.totalorder %s1305_s14, 3  ;;  %s2655_s17 = smov (%p31_p4, %s2653_s17), 0 }
  0x10   : > { %2608 = sst [smem:[#allocation13_spill]] %s2655_s17  ;;  %p1835_p8 = por %p52_p6, %p51_p5 }
  0x11   : > { %p1839_p9 = por %p77_p7, %p45_p1  ;;  %s33_s22 = ssub.s32 %s1751_s12, %s2655_s17 }
  0x12   : > { %p83_p10 = scmp.eq.s32.totalorder %s1306_s15, 3  ;;  %s35_s23 = sor.u32 %s34_s18, %s33_s22 }
  0x13   : > { %s38_s24 = sadd.s32 1, %s1735_s8  ;;  %p36_p11 = scmp.eq.s32.totalorder %s35_s23, 0 }
  0x14   : > { %p1846_p12 = por %p83_p10, %p51_p5  ;;  %p1308_p13 = scmp.ge.s32.totalorder %s1755_s13, 4 }
  0x15   : > { %s1851_s26 = scalar_select %p36_p11, %s1735_s8, %s38_s24  }
  0x16   : > { %99 = sbr.rel (%p1308_p13) target bundleno = 44 (0x2c), region = 16 }
  0x1b   : > { %s103_s27 = sand.u32 1, %s1735_s8   ;;  %s1309_s29 = sshll.u32 %s1747_s11, 4 }
  0x1c   : > { %s1433_s28 = smul.u32 384, %s103_s27  ;;  %s1757_s2 = smov 4096  }
  0x1d   : > { %s1434_s30 = smul.u32 96, %s1751_s12  ;;  %1437 = sst [smem:[#allocation7]] (%p1827_p3), %s1757_s2 }
  0x1e   : > { %s1436_s18 = scalar_select %p1827_p3, [#allocation0], [#allocation8] }
  0x1f   : > { %s112_s3 = sadd.s32 %s1434_s30, %s1309_s29  ;;  %s107_s22 = scalar_lea.vmem [#allocation2], %s1433_s28 }
  0x20   : > { %s1310_s4 = sshll.u32 %s112_s3, 3  ;;  %s129_s23 = sshll.u32 %s107_s22, 4  ;;  %s130_s23 = int_to_ptr.vmem [resolvable:$true] %s129_s23 }
  0x21   : > { %s114_s15 = scalar_lea.hbm %s2585_s0, %s1310_s4  ;;  %s1758_s24 = smov 2048  }
  0x22   : > { %1438 = sst [smem:[#allocation7 + $0x1]] (%p1827_p3), %s1758_s24  ;;  %s127_s16 = sshll.u32 %s114_s15, 4  ;;  %s128_s16 = int_to_ptr.hbm [resolvable:$true] %s127_s16 }
  0x23   : > { %s119_s17 = sld [smem:[%s1436_s18]]   ;;  %s1759_s12 = smov 8  }
  0x24   : > { %1439 = sst [smem:[#allocation7 + $0x2]] (%p1827_p3), %s1759_s12  ;;  %s1760_s29 = smov 256  }
  0x25   : > { %1440 = sst [smem:[#allocation7 + $0x3]] (%p1827_p3), %s1760_s29  ;;  %s1761_s30 = smov 16  }
  0x26   : > { %1441 = sst [smem:[#allocation7 + $0x4]] (%p1827_p3), %s1760_s29  ;;  %s104_s3 = scalar_lea.sflag [#allocation3], %s103_s27 }
  0x27   : > { %1442 = sst [smem:[#allocation7 + $0x5]] (%p1827_p3), %s1761_s30  ;;  %s1762_s4 = smov [#allocation6]  }
  0x29   : > { %s1311_s28 = sshll.u32 %s119_s17, 26 }
  0x2a   : > { %s1312_s2 = sadd.s32 134217728, %s1311_s28 }
  0x2b   : > { %1443 = dma.general (%p1827_p3), %s128_s16, 6144, %s130_s23, %s104_s3, %s1762_s4, [#allocation7], %s1312_s2, 0  }
  0x2c PF: > { %p1313_p0 = scmp.ge.s32.totalorder %s1755_s13, 1  ;;  %p150_p1 = scmp.lt.s32.totalorder %s1755_s13, 5 }
  0x2e   : > { %p151_p2 = pnand %p1313_p0, %p150_p1 }
  0x30   : > { %154 = sbr.rel (%p151_p2) target bundleno = 894 (0x37e), region = 24 }
  0x35   : > { %s1879_s12 = sand.u32 1, %s1731_s7  }
  0x36   : > { %s1435_s5 = smul.u32 384, %s1879_s12  ;;  %s157_s17 = scalar_lea.sflag [#allocation3], %s1879_s12 }
  0x38   : > { %s1883_s14 = scalar_lea.vmem [#allocation2], %s1435_s5 }
  0x39   : > { %1718 = dma.done.wait (%p1835_p8), %s157_s17, 6144  }
  0x3a   : > { %1720 = vsyncadd (%p1835_p8), %s157_s17, 4294961152  ;;  %v1315_v0 = vld [vmem:[%s1883_s14 + $0x80] sm:$0xff]  ;;  %v1317_v1 = vld [vmem:[%s1883_s14 + $0x90] sm:$0xff]  ;;  %vm310_vm0 = vcmask 523264   ;;  %s1314_s16 = sshll.u32 %s1879_s12, 7  ;;  %s1412_s20 = sshll.u32 %s1739_s9, 4 }
  0x3b   : > { %246 = vxpose.xlu0.b32.start [1/8] (short) %v1315_v0, 128  ;;  %v1319_v2 = vld [vmem:[%s1883_s14 + $0xa0] sm:$0xff]  ;;  %v1321_v3 = vld [vmem:[%s1883_s14 + $0xb0] sm:$0xff]  ;;  %v1316_v4 = vld [vmem:[%s1883_s14 + $0x88] sm:$0xff]  ;;  %s2520_s19 = scalar_lea.vmem [#allocation5], %s1314_s16  ;;  %s1413_s27 = sshll.u32 %s1743_s10, 5 }
  0x3c   : > { %278 = vxpose.xlu1.b32.start [1/8] (short) %v1316_v4, 128  ;;  %v1323_v5 = vld [vmem:[%s1883_s14 + $0xc0] sm:$0xff]  ;;  %v1318_v6 = vld [vmem:[%s1883_s14 + $0x98] sm:$0xff]  ;;  %v1325_v7 = vld [vmem:[%s1883_s14 + $0xd0] sm:$0xff]  ;;  %s1209_s15 = sadd.s32 %s1413_s27, %s1412_s20  ;;  %s1212_s29 = sshll.u32 %s2520_s19, 4  ;;  %s1213_s29 = int_to_ptr.vmem [resolvable:$true] %s1212_s29 }
  0x3d   : > { %v1320_v8 = vld [vmem:[%s1883_s14 + $0xa8] sm:$0xff]  ;;  %v1327_v9 = vld [vmem:[%s1883_s14 + $0xe0] sm:$0xff]  ;;  %v1322_v10 = vld [vmem:[%s1883_s14 + $0xb8] sm:$0xff]  ;;  %s1414_s18 = sshll.u32 %s1209_s15, 3  ;;  %s1198_s10 = scalar_lea.sflag [#allocation4], %s1879_s12 }
  0x3e   : > { %v194_v11 = vld [vmem:[%s1883_s14 + $0x70] sm:$0xff]  ;;  %v195_v12 = vld [vmem:[%s1883_s14 + $0x78] sm:$0xff]  ;;  %v192_v13 = vld [vmem:[%s1883_s14 + $0x60] sm:$0xff]  ;;  %s1211_s24 = scalar_lea.hbm %s2586_s1, %s1414_s18  ;;  %s1677_s4 = scalar_lea.hbm %s2586_s1, 512 }
  0x3f   : > { %v244_v14 = vmul.f32 0.125, %v194_v11  ;;  %v245_v15 = vmul.f32 0.125, %v195_v12  ;;  %v242_v16 = vmul.f32 0.125, %v192_v13  ;;  %v193_v17 = vld [vmem:[%s1883_s14 + $0x68] sm:$0xff]  ;;  %v190_v18 = vld [vmem:[%s1883_s14 + $0x50] sm:$0xff]  ;;  %v191_v19 = vld [vmem:[%s1883_s14 + $0x58] sm:$0xff] }
  0x40   : > { %v243_v20 = vmul.f32 0.125, %v193_v17  ;;  %v188_v21 = vld [vmem:[%s1883_s14 + $0x40] sm:$0xff]  ;;  %v240_v22 = vmul.f32 0.125, %v190_v18  ;;  %v189_v23 = vld [vmem:[%s1883_s14 + $0x48] sm:$0xff]  ;;  %v1329_v24 = vld [vmem:[%s1883_s14 + $0xf0] sm:$0xff]  ;;  %v241_v25 = vmul.f32 0.125, %v191_v19 }
  0x41   : > { %415 = vmatpush.msra.mxu0 %v244_v14  ;;  %528 = vmatpush.msra.mxu1 %v245_v15  ;;  %v186_v26 = vld [vmem:[%s1883_s14 + $0x30] sm:$0xff]  ;;  %v1324_v27 = vld [vmem:[%s1883_s14 + $0xc8] sm:$0xff]  ;;  %v238_v28 = vmul.f32 0.125, %v188_v21  ;;  %v187_v29 = vld [vmem:[%s1883_s14 + $0x38] sm:$0xff]  ;;  %v239_v30 = vmul.f32 0.125, %v189_v23  ;;  %s1214_s9 = sshll.u32 %s1211_s24, 4  ;;  %s1215_s9 = int_to_ptr.hbm [resolvable:$true] %s1214_s9 }
  0x42   : > { %1425 = vmatpush.msra.mxu3 %v245_v15  ;;  %1417 = vmatpush.msra.mxu2 %v244_v14  ;;  %v184_v31 = vld [vmem:[%s1883_s14 + $0x20] sm:$0xff]  ;;  %v236_v32 = vmul.f32 0.125, %v186_v26  ;;  %v185_v33 = vld [vmem:[%s1883_s14 + $0x28] sm:$0xff]  ;;  %v237_v34 = vmul.f32 0.125, %v187_v29  ;;  %v182_v35 = vld [vmem:[%s1883_s14 + $0x10] sm:$0xff]  ;;  %s1671_s30 = sshra.s32 %s1215_s9, 4  ;;  %s1672_s30 = int_to_ptr.hbm [resolvable:$true] %s1671_s30 }
  0x43   : > { %247 = vxpose.xlu0.b32.cont [2/8] (short) %v1317_v1, 128  ;;  %416 = vmatpush.msra.mxu0 %v242_v16  ;;  %v234_v36 = vmul.f32 0.125, %v184_v31  ;;  %v183_v37 = vld [vmem:[%s1883_s14 + $0x18] sm:$0xff]  ;;  %v235_v38 = vmul.f32 0.125, %v185_v33  ;;  %v232_v39 = vmul.f32 0.125, %v182_v35  ;;  %v1328_v42 = vld [vmem:[%s1883_s14 + $0xe8] sm:$0xff]  ;;  %v180_v44 = vld [vmem:[%s1883_s14] sm:$0xff]  ;;  %p1678_p6 = scmp.lt.s32.totalorder %s1672_s30, %s2586_s1 }
  0x44   : > { %279 = vxpose.xlu1.b32.cont [2/8] (short) %v1318_v6, 128  ;;  %529 = vmatpush.msra.mxu1 %v243_v20  ;;  %v233_v40 = vmul.f32 0.125, %v183_v37  ;;  %v1326_v41 = vld [vmem:[%s1883_s14 + $0xd8] sm:$0xff]  ;;  %v181_v45 = vld [vmem:[%s1883_s14 + $0x8] sm:$0xff]  ;;  %v230_v46 = vmul.f32 0.125, %v180_v44  ;;  %s1673_s28 = scalar_lea.hbm %s1672_s30, 128 }
  0x45   : > { %1426 = vmatpush.msra.mxu3 %v243_v20  ;;  %1418 = vmatpush.msra.mxu2 %v242_v16  ;;  %v1330_v43 = vld [vmem:[%s1883_s14 + $0xf8] sm:$0xff]  ;;  %v231_v47 = vmul.f32 0.125, %v181_v45  ;;  %p1674_p3 = scmp.ne.s32.totalorder %s1672_s30, %s1673_s28  ;;  %p1679_p7 = scmp.lt.s32.totalorder %s1677_s4, %s1673_s28 }
  0x46   : > { %417 = vmatpush.msra.mxu0 %v240_v22  ;;  %530 = vmatpush.msra.mxu1 %v241_v25 }
  0x47   : > { %1427 = vmatpush.msra.mxu3 %v241_v25  ;;  %1419 = vmatpush.msra.mxu2 %v240_v22  ;;  %p1675_p4 = pnand %p1674_p3, %p1839_p9  ;;  %p1680_p8 = por %p1679_p7, %p1678_p6 }
  0x48   : > { %418 = vmatpush.msra.mxu0 %v238_v28  ;;  %531 = vmatpush.msra.mxu1 %v239_v30 }
  0x49   : > { %1428 = vmatpush.msra.mxu3 %v239_v30  ;;  %1420 = vmatpush.msra.mxu2 %v238_v28  ;;  %p1676_p5 = pneg %p1675_p4 }
  0x4a   : > { %419 = vmatpush.msra.mxu0 %v236_v32  ;;  %532 = vmatpush.msra.mxu1 %v237_v34 }
  0x4b   : > { %248 = vxpose.xlu0.b32.cont [3/8] (short) %v1319_v2, 128  ;;  %1429 = vmatpush.msra.mxu3 %v237_v34  ;;  %p1681_p10 = pnand %p1680_p8, %p1676_p5 }
  0x4c   : > { %280 = vxpose.xlu1.b32.cont [3/8] (short) %v1320_v8, 128  ;;  %420 = vmatpush.msra.mxu0 %v234_v36 }
  0x4d   : > { %533 = vmatpush.msra.mxu1 %v235_v38  ;;  %1421 = vmatpush.msra.mxu2 %v236_v32 }
  0x4e   : > { %421 = vmatpush.msra.mxu0 %v232_v39  ;;  %1430 = vmatpush.msra.mxu3 %v235_v38 }
  0x4f   : > { %534 = vmatpush.msra.mxu1 %v233_v40  ;;  %1422 = vmatpush.msra.mxu2 %v234_v36 }
  0x50   : > { %1431 = vmatpush.msra.mxu3 %v233_v40  ;;  %422 = vmatpush.msra.mxu0 %v230_v46 }
  0x51   : > { %1423 = vmatpush.msra.mxu2 %v232_v39  ;;  %535 = vmatpush.msra.mxu1 %v231_v47 }
  0x52   : > { %1432 = vmatpush.msra.mxu3 %v231_v47 }
  0x53   : > { %249 = vxpose.xlu0.b32.cont [4/8] (short) %v1321_v3, 128  ;;  %1424 = vmatpush.msra.mxu2 %v230_v46 }
  0x54   : > { %281 = vxpose.xlu1.b32.cont [4/8] (short) %v1322_v10, 128 }
  0x5b   : > { %250 = vxpose.xlu0.b32.cont [5/8] (short) %v1323_v5, 128 }
  0x5c   : > { %282 = vxpose.xlu1.b32.cont [5/8] (short) %v1324_v27, 128 }
  0x63   : > { %251 = vxpose.xlu0.b32.cont [6/8] (short) %v1325_v7, 128 }
  0x64   : > { %283 = vxpose.xlu1.b32.cont [6/8] (short) %v1326_v41, 128 }
  0x6b   : > { %252 = vxpose.xlu0.b32.cont [7/8] (short) %v1327_v9, 128 }
  0x6c   : > { %284 = vxpose.xlu1.b32.cont [7/8] (short) %v1328_v42, 128 }
  0x73   : > { %253 = vxpose.xlu0.b32.end [8/8] (short) %v1329_v24, 128 }
  0x74   : > { %285 = vxpose.xlu1.b32.end [8/8] (short) %v1330_v43, 128 }
  0xdf   : > { %v262_v48 = vpop.trf.xlu0 }
  0xe0   : > { %1347 = vmatmul.msk.f32.vlgmr.msra.gmra.mxu0 %vm310_vm0, %v262_v48  ;;  %1379 = vmatmul.msk.f32.vlgmr.msra.gmra.mxu1 %vm310_vm0, %v262_v48  ;;  %v294_v53 = vpop.trf.xlu1 }
  0xe7   : > { %v263_v49 = vpop.trf.xlu0 }
  0xe8   : > { %1348 = vmatmul.msk.f32.gmra.mxu0 %vm310_vm0, %v263_v49  ;;  %1380 = vmatmul.msk.f32.gmra.mxu1 %vm310_vm0, %v263_v49  ;;  %v295_v55 = vpop.trf.xlu1 }
  0xef   : > { %v264_v50 = vpop.trf.xlu0 }
  0xf0   : > { %1349 = vmatmul.msk.f32.gmra.mxu0 %vm310_vm0, %v264_v50  ;;  %1381 = vmatmul.msk.f32.gmra.mxu1 %vm310_vm0, %v264_v50  ;;  %v296_v57 = vpop.trf.xlu1 }
  0xf7   : > { %v265_v51 = vpop.trf.xlu0 }
  0xf8   : > { %1350 = vmatmul.msk.f32.gmra.mxu0 %vm310_vm0, %v265_v51  ;;  %1382 = vmatmul.msk.f32.gmra.mxu1 %vm310_vm0, %v265_v51  ;;  %v1937_v59 = vpop.trf.xlu1 }
  0xff   : > { %v266_v52 = vpop.trf.xlu0 }
 0x100   : > { %1351 = vmatmul.msk.f32.gmra.mxu0 %vm310_vm0, %v266_v52  ;;  %1383 = vmatmul.msk.f32.gmra.mxu1 %vm310_vm0, %v266_v52  ;;  %v1941_v61 = vpop.trf.xlu1 }
 0x107   : > { %v267_v54 = vpop.trf.xlu0 }
 0x108   : > { %1352 = vmatmul.msk.f32.gmra.mxu0 %vm310_vm0, %v267_v54  ;;  %1384 = vmatmul.msk.f32.gmra.mxu1 %vm310_vm0, %v267_v54  ;;  %v1945_v63 = vpop.trf.xlu1 }
 0x10f   : > { %v268_v56 = vpop.trf.xlu0 }
 0x110   : > { %1353 = vmatmul.msk.f32.gmra.mxu0 %vm310_vm0, %v268_v56  ;;  %1385 = vmatmul.msk.f32.gmra.mxu1 %vm310_vm0, %v268_v56  ;;  %v1949_v1 = vpop.trf.xlu1 }
 0x117   : > { %v269_v58 = vpop.trf.xlu0 }
 0x118   : > { %1354 = vmatmul.msk.f32.gmra.mxu0 %vm310_vm0, %v269_v58  ;;  %1386 = vmatmul.msk.f32.gmra.mxu1 %vm310_vm0, %v269_v58  ;;  %v1953_v3 = vpop.trf.xlu1 }
 0x11f   : > { %v270_v60 = vpop.trf.xlu0 }
 0x120   : > { %1355 = vmatmul.msk.f32.gmra.mxu0 %vm310_vm0, %v270_v60  ;;  %1387 = vmatmul.msk.f32.gmra.mxu1 %vm310_vm0, %v270_v60  ;;  %v1957_v5 = vpop.trf.xlu1 }
 0x121   : > { %1403 = vmatmul.msk.f32.vlgmr.msra.gmra.mxu3 %vm310_vm0, %v1957_v5 }
 0x127   : > { %v271_v62 = vpop.trf.xlu0 }
 0x128   : > { %1356 = vmatmul.msk.f32.gmra.mxu0 %vm310_vm0, %v271_v62  ;;  %1388 = vmatmul.msk.f32.gmra.mxu1 %vm310_vm0, %v271_v62  ;;  %v303_v7 = vpop.trf.xlu1 }
 0x129   : > { %1372 = vmatmul.msk.f32.vlgmr.msra.gmra.mxu2 %vm310_vm0, %v303_v7  ;;  %1404 = vmatmul.msk.f32.gmra.mxu3 %vm310_vm0, %v303_v7 }
 0x12f   : > { %v272_v0 = vpop.trf.xlu0 }
 0x130   : > { %1357 = vmatmul.msk.f32.gmra.mxu0 %vm310_vm0, %v272_v0  ;;  %1389 = vmatmul.msk.f32.gmra.mxu1 %vm310_vm0, %v272_v0  ;;  %v304_v9 = vpop.trf.xlu1 }
 0x131   : > { %1373 = vmatmul.msk.f32.gmra.mxu2 %vm310_vm0, %v304_v9  ;;  %1405 = vmatmul.msk.f32.gmra.mxu3 %vm310_vm0, %v304_v9 }
 0x137   : > { %v273_v2 = vpop.trf.xlu0 }
 0x138   : > { %1358 = vmatmul.msk.f32.gmra.mxu0 %vm310_vm0, %v273_v2  ;;  %1390 = vmatmul.msk.f32.gmra.mxu1 %vm310_vm0, %v273_v2  ;;  %v305_v11 = vpop.trf.xlu1 }
 0x139   : > { %1374 = vmatmul.msk.f32.gmra.mxu2 %vm310_vm0, %v305_v11  ;;  %1406 = vmatmul.msk.f32.gmra.mxu3 %vm310_vm0, %v305_v11 }
 0x13f   : > { %v274_v4 = vpop.trf.xlu0 }
 0x140   : > { %1359 = vmatmul.msk.f32.gmra.mxu0 %vm310_vm0, %v274_v4  ;;  %1391 = vmatmul.msk.f32.gmra.mxu1 %vm310_vm0, %v274_v4  ;;  %v306_v14 = vpop.trf.xlu1 }
 0x141   : > { %1375 = vmatmul.msk.f32.gmra.mxu2 %vm310_vm0, %v306_v14  ;;  %1407 = vmatmul.msk.f32.gmra.mxu3 %vm310_vm0, %v306_v14 }
 0x147   : > { %v275_v6 = vpop.trf.xlu0 }
 0x148   : > { %1360 = vmatmul.msk.f32.gmra.mxu0 %vm310_vm0, %v275_v6  ;;  %1392 = vmatmul.msk.f32.gmra.mxu1 %vm310_vm0, %v275_v6  ;;  %v307_v17 = vpop.trf.xlu1 }
 0x149   : > { %1376 = vmatmul.msk.f32.gmra.mxu2 %vm310_vm0, %v307_v17  ;;  %1408 = vmatmul.msk.f32.gmra.mxu3 %vm310_vm0, %v307_v17 }
 0x14f   : > { %v276_v8 = vpop.trf.xlu0 }
 0x150   : > { %1361 = vmatmul.msk.f32.gmra.mxu0 %vm310_vm0, %v276_v8  ;;  %1393 = vmatmul.msk.f32.gmra.mxu1 %vm310_vm0, %v276_v8  ;;  %v308_v20 = vpop.trf.xlu1 }
 0x151   : > { %1377 = vmatmul.msk.f32.gmra.mxu2 %vm310_vm0, %v308_v20  ;;  %1409 = vmatmul.msk.f32.gmra.mxu3 %vm310_vm0, %v308_v20 }
 0x157   : > { %v277_v10 = vpop.trf.xlu0 }
 0x158   : > { %1362 = vmatmul.msk.f32.gmra.mxu0 %vm310_vm0, %v277_v10  ;;  %1394 = vmatmul.msk.f32.gmra.mxu1 %vm310_vm0, %v277_v10  ;;  %v309_v23 = vpop.trf.xlu1 }
 0x159   : > { %1378 = vmatmul.msk.f32.gmra.mxu2 %vm310_vm0, %v309_v23  ;;  %1410 = vmatmul.msk.f32.gmra.mxu3 %vm310_vm0, %v309_v23 }
 0x15d   : > { %v1973_v12 = vpop.f32.mrf.mxu0  ;;  %v1975_v13 = vpop.f32.mrf.mxu1 }
 0x160   : > { %1363 = vmatmul.msk.f32.gmra.mxu0 %vm310_vm0, %v294_v53  ;;  %1395 = vmatmul.msk.f32.gmra.mxu1 %vm310_vm0, %v294_v53 }
 0x165   : > { %v1981_v15 = vpop.f32.mrf.mxu0  ;;  %v1983_v16 = vpop.f32.mrf.mxu1 }
 0x168   : > { %1364 = vmatmul.msk.f32.gmra.mxu0 %vm310_vm0, %v295_v55  ;;  %1396 = vmatmul.msk.f32.gmra.mxu1 %vm310_vm0, %v295_v55 }
 0x16d   : > { %v1989_v18 = vpop.f32.mrf.mxu0  ;;  %v1991_v19 = vpop.f32.mrf.mxu1 }
 0x16e   : > { %2612 = vst [vmem:[#allocation14_spill] sm:$0xff] %v1991_v19 }
 0x170   : > { %1365 = vmatmul.msk.f32.gmra.mxu0 %vm310_vm0, %v296_v57  ;;  %1397 = vmatmul.msk.f32.gmra.mxu1 %vm310_vm0, %v296_v57 }
 0x175   : > { %v1997_v21 = vpop.f32.mrf.mxu0  ;;  %v1999_v22 = vpop.f32.mrf.mxu1 }
 0x176   : > { %2613 = vst [vmem:[#allocation15_spill] sm:$0xff] %v1999_v22 }
 0x178   : > { %1366 = vmatmul.msk.f32.gmra.mxu0 %vm310_vm0, %v1937_v59  ;;  %1398 = vmatmul.msk.f32.gmra.mxu1 %vm310_vm0, %v1937_v59 }
 0x17d   : > { %v2007_v24 = vpop.f32.mrf.mxu0  ;;  %v2009_v25 = vpop.f32.mrf.mxu1 }
 0x17e   : > { %2614 = vst [vmem:[#allocation16_spill] sm:$0xff] %v2009_v25 }
 0x180   : > { %1367 = vmatmul.msk.f32.gmra.mxu0 %vm310_vm0, %v1941_v61  ;;  %1399 = vmatmul.msk.f32.gmra.mxu1 %vm310_vm0, %v1941_v61 }
 0x185   : > { %v2015_v26 = vpop.f32.mrf.mxu0  ;;  %v2017_v27 = vpop.f32.mrf.mxu1 }
 0x186   : > { %2615 = vst [vmem:[#allocation17_spill] sm:$0xff] %v2017_v27 }
 0x188   : > { %1368 = vmatmul.msk.f32.gmra.mxu0 %vm310_vm0, %v1945_v63  ;;  %1400 = vmatmul.msk.f32.gmra.mxu1 %vm310_vm0, %v1945_v63  ;;  %v634_v63 = vmax.f32 %v1981_v15, %v1997_v21 }
 0x18d   : > { %v2023_v28 = vpop.f32.mrf.mxu0  ;;  %v2025_v29 = vpop.f32.mrf.mxu1 }
 0x18e   : > { %2616 = vst [vmem:[#allocation18_spill] sm:$0xff] %v2025_v29 }
 0x190   : > { %1369 = vmatmul.msk.f32.gmra.mxu0 %vm310_vm0, %v1949_v1  ;;  %1401 = vmatmul.msk.f32.gmra.mxu1 %vm310_vm0, %v1949_v1  ;;  %v636_v1 = vmax.f32 %v634_v63, %v2015_v26 }
 0x195   : > { %v2031_v30 = vpop.f32.mrf.mxu0  ;;  %v2033_v31 = vpop.f32.mrf.mxu1 }
 0x196   : > { %2617 = vst [vmem:[#allocation19_spill] sm:$0xff] %v2033_v31  ;;  %v638_v4 = vmax.f32 %v636_v1, %v2031_v30 }
 0x198   : > { %1370 = vmatmul.msk.f32.gmra.mxu0 %vm310_vm0, %v1953_v3  ;;  %1402 = vmatmul.msk.f32.gmra.mxu1 %vm310_vm0, %v1953_v3 }
 0x19d   : > { %v2039_v32 = vpop.f32.mrf.mxu0  ;;  %v2041_v33 = vpop.f32.mrf.mxu1 }
 0x1a0   : > { %1371 = vmatmul.msk.f32.gmra.mxu0 %vm310_vm0, %v1957_v5  ;;  %v633_v5 = vmax.f32 %v1973_v12, %v1989_v18 }
 0x1a2   : > { %v635_v7 = vmax.f32 %v633_v5, %v2007_v24  ;;  %v671_v5 = vmax.f32 %v1983_v16, %v1999_v22 }
 0x1a4   : > { %v2083_v53 = vpop.f32.mrf.mxu3  ;;  %v637_v10 = vmax.f32 %v635_v7, %v2023_v28 }
 0x1a5   : > { %v2045_v34 = vpop.f32.mrf.mxu0  ;;  %v2047_v35 = vpop.f32.mrf.mxu1 }
 0x1a6   : > { %2618 = vst [vmem:[#allocation20_spill] sm:$0xff] %v2047_v35  ;;  %v640_v6 = vmax.f32 %v638_v4, %v2045_v34  ;;  %v639_v20 = vmax.f32 %v637_v10, %v2039_v32  ;;  %v673_v10 = vmax.f32 %v671_v5, %v2017_v27 }
 0x1ac   : > { %v2079_v51 = vpop.f32.mrf.mxu2  ;;  %v2093_v58 = vpop.f32.mrf.mxu3 }
 0x1ad   : > { %v2049_v36 = vpop.f32.mrf.mxu0  ;;  %v2051_v37 = vpop.f32.mrf.mxu1 }
 0x1ae   : > { %v641_v1 = vmax.f32 %v639_v20, %v2049_v36 }
 0x1b4   : > { %v2087_v55 = vpop.f32.mrf.mxu2  ;;  %v2101_v62 = vpop.f32.mrf.mxu3 }
 0x1b5   : > { %v2053_v38 = vpop.f32.mrf.mxu0  ;;  %v2055_v39 = vpop.f32.mrf.mxu1 }
 0x1b6   : > { %2619 = vst [vmem:[#allocation21_spill] sm:$0xff] %v2053_v38  ;;  %v642_v8 = vmax.f32 %v640_v6, %v2053_v38 }
 0x1bc   : > { %v2095_v59 = vpop.f32.mrf.mxu2  ;;  %v2118_v9 = vpop.f32.mrf.mxu3 }
 0x1bd   : > { %v2057_v40 = vpop.f32.mrf.mxu0  ;;  %v2059_v41 = vpop.f32.mrf.mxu1 }
 0x1be   : > { %2620 = vst [vmem:[#allocation22_spill] sm:$0xff] %v2059_v41  ;;  %v643_v6 = vmax.f32 %v641_v1, %v2057_v40 }
 0x1c4   : > { %v2105_v0 = vpop.f32.mrf.mxu2 }
 0x1c5   : > { %v2061_v42 = vpop.f32.mrf.mxu0  ;;  %v2063_v43 = vpop.f32.mrf.mxu1 }
 0x1c6   : > { %2621 = vst [vmem:[#allocation23_spill] sm:$0xff] %v2061_v42  ;;  %v644_v11 = vmax.f32 %v642_v8, %v2061_v42  ;;  %v670_v8 = vmax.f32 %v1975_v13, %v1991_v19  ;;  %v2141_v42 = vpop.f32.mrf.mxu3 }
 0x1c7   : > { %2622 = vst [vmem:[#allocation24_spill] sm:$0xff] %v2063_v43 }
 0x1c8   : > { %v672_v20 = vmax.f32 %v670_v8, %v2009_v25 }
 0x1ca   : > { %v674_v19 = vmax.f32 %v672_v20, %v2025_v29 }
 0x1cc   : > { %v2124_v17 = vpop.f32.mrf.mxu2 }
 0x1cd   : > { %v2065_v44 = vpop.f32.mrf.mxu0  ;;  %v2067_v45 = vpop.f32.mrf.mxu1 }
 0x1d4   : > { %v2151_v27 = vpop.f32.mrf.mxu2 }
 0x1d5   : > { %v2069_v46 = vpop.f32.mrf.mxu0  ;;  %v2071_v47 = vpop.f32.mrf.mxu1 }
 0x1d6   : > { %v646_v23 = vmax.f32 %v644_v11, %v2069_v46  ;;  %v645_v11 = vmax.f32 %v643_v6, %v2065_v44 }
 0x1dd   : > { %v2073_v48 = vpop.f32.mrf.mxu0  ;;  %v2075_v49 = vpop.f32.mrf.mxu1 }
 0x1de   : > { %2623 = vst [vmem:[#allocation25_spill] sm:$0xff] %v2075_v49  ;;  %v647_v1 = vmax.f32 %v645_v11, %v2073_v48 }
 0x1e5   : > { %v2077_v50 = vpop.f32.mrf.mxu0  ;;  %v2081_v52 = vpop.f32.mrf.mxu1 }
 0x1e6   : > { %2624 = vst [vmem:[#allocation26_spill] sm:$0xff] %v2081_v52  ;;  %v648_v4 = vmax.f32 %v646_v23, %v2077_v50  ;;  %v675_v23 = vmax.f32 %v673_v10, %v2033_v31  ;;  %v676_v10 = vmax.f32 %v674_v19, %v2041_v33 }
 0x1e8   : > { %v677_v5 = vmax.f32 %v675_v23, %v2047_v35 }
 0x1ea   : > { %v679_v31 = vmax.f32 %v677_v5, %v2055_v39 }
 0x1ec   : > { %v681_v20 = vmax.f32 %v679_v31, %v2063_v43 }
 0x1ed   : > { %v2085_v54 = vpop.f32.mrf.mxu0  ;;  %v2089_v56 = vpop.f32.mrf.mxu1 }
 0x1ee   : > { %v649_v6 = vmax.f32 %v647_v1, %v2085_v54  ;;  %v683_v29 = vmax.f32 %v681_v20, %v2071_v47 }
 0x1f5   : > { %v2091_v57 = vpop.f32.mrf.mxu0  ;;  %v2097_v60 = vpop.f32.mrf.mxu1 }
 0x1f6   : > { %2625 = vst [vmem:[#allocation27_spill] sm:$0xff] %v2097_v60  ;;  %v650_v7 = vmax.f32 %v648_v4, %v2091_v57 }
 0x1fd   : > { %v2099_v61 = vpop.f32.mrf.mxu0  ;;  %v2108_v2 = vpop.f32.mrf.mxu1 }
 0x1fe   : > { %v651_v11 = vmax.f32 %v649_v6, %v2099_v61  ;;  %v685_v6 = vmax.f32 %v683_v29, %v2081_v52 }
 0x205   : > { %v2110_v3 = vpop.f32.mrf.mxu0  ;;  %v2128_v63 = vpop.f32.mrf.mxu1 }
 0x206   : > { %2626 = vst [vmem:[#allocation28_spill] sm:$0xff] %v2128_v63  ;;  %v652_v38 = vmax.f32 %v650_v7, %v2110_v3 }
 0x20d   : > { %v2122_v14 = vpop.f32.mrf.mxu0  ;;  %v2154_v7 = vpop.f32.mrf.mxu1 }
 0x20e   : > { %v653_v23 = vmax.f32 %v651_v11, %v2122_v14  ;;  %v687_v11 = vmax.f32 %v685_v6, %v2097_v60 }
 0x215   : > { %v2145_v22 = vpop.f32.mrf.mxu0  ;;  %v2179_v20 = vpop.f32.mrf.mxu1 }
 0x216   : > { %v654_v4 = vmax.f32 %v652_v38, %v2145_v22  ;;  %v678_v38 = vmax.f32 %v676_v10, %v2051_v37 }
 0x218   : > { %v656_v8 = vmax.f32 %v654_v4, %v2079_v51  ;;  %v680_v1 = vmax.f32 %v678_v38, %v2059_v41  ;;  %v2168_v4 = vpop.f32.mrf.mxu3  ;;  %v2177_v38 = vpop.f32.mrf.mxu2 }
 0x21a   : > { %v658_v35 = vmax.f32 %v656_v8, %v2095_v59  ;;  %v682_v5 = vmax.f32 %v680_v1, %v2067_v45  ;;  %v689_v1 = vmax.f32 %v687_v11, %v2128_v63 }
 0x21c   : > { %v660_v10 = vmax.f32 %v658_v35, %v2124_v17  ;;  %v684_v8 = vmax.f32 %v682_v5, %v2075_v49  ;;  %v691_v5 = vmax.f32 %v689_v1, %v2179_v20 }
 0x21d   : > { %v2166_v25 = vpop.f32.mrf.mxu0 }
 0x21e   : > { %v655_v19 = vmax.f32 %v653_v23, %v2166_v25  ;;  %v686_v23 = vmax.f32 %v684_v8, %v2089_v56 }
 0x220   : > { %v657_v31 = vmax.f32 %v655_v19, %v2087_v55  ;;  %v662_v19 = vmax.f32 %v660_v10, %v2177_v38  ;;  %v688_v35 = vmax.f32 %v686_v23, %v2108_v2  ;;  %v2189_v60 = vpop.f32.mrf.mxu3 }
 0x222   : > { %v659_v41 = vmax.f32 %v657_v31, %v2105_v0  ;;  %v690_v6 = vmax.f32 %v688_v35, %v2154_v7  ;;  %v693_v31 = vmax.f32 %v691_v5, %v2093_v58 }
 0x224   : > { %v661_v29 = vmax.f32 %v659_v41, %v2151_v27  ;;  %v692_v8 = vmax.f32 %v690_v6, %v2083_v53  ;;  %v695_v41 = vmax.f32 %v693_v31, %v2118_v9 }
 0x226   : > { %v663_v52 = vmax.f32 %v661_v29, %v662_v19  ;;  %v694_v10 = vmax.f32 %v692_v8, %v2101_v62  ;;  %v697_v1 = vmax.f32 %v695_v41, %v2168_v4 }
 0x228   : > { %v664_v49 = vrot.slane %v663_v52, 4  ;;  %v2196_v29 = vpop.f32.mrf.mxu3  ;;  %v696_v19 = vmax.f32 %v694_v10, %v2141_v42 }
 0x229   : > { %v699_v5 = vmax.f32 %v697_v1, %v2196_v29 }
 0x22a   : > { %v665_v43 = vmax.f32 %v663_v52, %v664_v49  ;;  %v698_v49 = vmax.f32 %v696_v19, %v2189_v60 }
 0x22c   : > { %v666_v11 = vrot.slane %v665_v43, 2  ;;  %v700_v31 = vmax.f32 %v698_v49, %v699_v5 }
 0x22e   : > { %v667_v63 = vmax.f32 %v665_v43, %v666_v11 }
 0x230   : > { %v668_v23 = vrot.slane %v667_v63, 1 }
 0x232   : > { %v2199_v35 = vmax.f32 %v667_v63, %v668_v23  ;;  %v701_v23 = vrot.slane %v700_v31, 4 }
 0x234   : > { %v707_v52 = vsub.f32 %v1973_v12, %v2199_v35  ;;  %v709_v43 = vsub.f32 %v1981_v15, %v2199_v35  ;;  %v711_v6 = vsub.f32 %v1989_v18, %v2199_v35  ;;  %v713_v8 = vsub.f32 %v1997_v21, %v2199_v35 }
 0x235   : > { %v715_v41 = vsub.f32 %v2007_v24, %v2199_v35  ;;  %v717_v12 = vsub.f32 %v2015_v26, %v2199_v35  ;;  %v719_v18 = vsub.f32 %v2023_v28, %v2199_v35  ;;  %v702_v19 = vmax.f32 %v700_v31, %v701_v23 }
 0x236   : > { %v771_v11 = vmul.f32 1.442695, %v707_v52  ;;  %v775_v63 = vmul.f32 1.442695, %v709_v43  ;;  %v779_v10 = vmul.f32 1.442695, %v711_v6  ;;  %v721_v21 = vsub.f32 %v2031_v30, %v2199_v35 }
 0x237   : > { %v783_v15 = vmul.f32 1.442695, %v713_v8  ;;  %v787_v1 = vmul.f32 1.442695, %v715_v41  ;;  %v791_v5 = vmul.f32 1.442695, %v717_v12  ;;  %v723_v49 = vsub.f32 %v2039_v32, %v2199_v35 }
 0x238   : > { %1525 = vpow2.f32 %v771_v11  ;;  %v737_v26 = vsub.f32 %v2069_v46, %v2199_v35  ;;  %v795_v28 = vmul.f32 1.442695, %v719_v18  ;;  %v703_v43 = vrot.slane %v702_v19, 2 }
 0x239   : > { %1527 = vpow2.f32 %v775_v63  ;;  %v725_v6 = vsub.f32 %v2045_v34, %v2199_v35  ;;  %v735_v8 = vsub.f32 %v2065_v44, %v2199_v35  ;;  %v799_v32 = vmul.f32 1.442695, %v721_v21  ;;  %v2627_v34 = vld [vmem:[#allocation23_spill] sm:$0xff] }
 0x23a   : > { %1529 = vpow2.f32 %v779_v10  ;;  %v727_v11 = vsub.f32 %v2049_v36, %v2199_v35  ;;  %v803_v46 = vmul.f32 1.442695, %v723_v49  ;;  %v733_v10 = vsub.f32 %v2627_v34, %v2199_v35 }
 0x23b   : > { %1531 = vpow2.f32 %v783_v15  ;;  %v831_v23 = vmul.f32 1.442695, %v737_v26  ;;  %v704_v12 = vmax.f32 %v702_v19, %v703_v43  ;;  %v2628_v15 = vld [vmem:[#allocation21_spill] sm:$0xff]  ;;  %v807_v44 = vmul.f32 1.442695, %v725_v6 }
 0x23c   : > { %1533 = vpow2.f32 %v787_v1  ;;  %v729_v18 = vsub.f32 %v2628_v15, %v2199_v35  ;;  %v731_v36 = vsub.f32 %v2057_v40, %v2199_v35  ;;  %v739_v49 = vsub.f32 %v2073_v48, %v2199_v35 }
 0x23d   : > { %1535 = vpow2.f32 %v791_v5  ;;  %v827_v5 = vmul.f32 1.442695, %v735_v8  ;;  %v741_v43 = vsub.f32 %v2077_v50, %v2199_v35  ;;  %v823_v6 = vmul.f32 1.442695, %v733_v10 }
 0x23e   : > { %v2219_v24 = vpop.eup %1525  ;;  %1537 = vpow2.f32 %v795_v28  ;;  %v811_v28 = vmul.f32 1.442695, %v727_v11  ;;  %v743_v40 = vsub.f32 %v2085_v54, %v2199_v35  ;;  %v815_v8 = vmul.f32 1.442695, %v729_v18 }
 0x23f   : > { %v2223_v52 = vpop.eup %1527  ;;  %1539 = vpow2.f32 %v799_v32  ;;  %v745_v11 = vsub.f32 %v2091_v57, %v2199_v35  ;;  %v747_v50 = vsub.f32 %v2099_v61, %v2199_v35  ;;  %v749_v54 = vsub.f32 %v2110_v3, %v2199_v35 }
 0x240   : > { %v899_v30 = vadd.f32 %v2223_v52, %v2219_v24  ;;  %v2231_v31 = vpop.eup %1529  ;;  %1541 = vpow2.f32 %v803_v46  ;;  %v819_v46 = vmul.f32 1.442695, %v731_v36  ;;  %v751_v57 = vsub.f32 %v2122_v14, %v2199_v35 }
 0x241   : > { %v2238_v41 = vpop.eup %1531  ;;  %1543 = vpow2.f32 %v831_v23  ;;  %v839_v23 = vmul.f32 1.442695, %v741_v43  ;;  %v843_v61 = vmul.f32 1.442695, %v743_v40  ;;  %v753_v36 = vsub.f32 %v2145_v22, %v2199_v35 }
 0x242   : > { %v900_v63 = vadd.f32 %v2231_v31, %v899_v30  ;;  %v2245_v21 = vpop.eup %1533  ;;  %v705_v30 = vrot.slane %v704_v12, 1  ;;  %1545 = vpow2.f32 %v807_v44  ;;  %v847_v3 = vmul.f32 1.442695, %v745_v11 }
 0x243   : > { %v2252_v26 = vpop.eup %1535  ;;  %1547 = vpow2.f32 %v827_v5  ;;  %v855_v43 = vmul.f32 1.442695, %v749_v54 }
 0x244   : > { %v901_v1 = vadd.f32 %v2238_v41, %v900_v63  ;;  %v2259_v48 = vpop.eup %1537  ;;  %1549 = vpow2.f32 %v811_v28  ;;  %v835_v63 = vmul.f32 1.442695, %v739_v49  ;;  %v2270_v15 = vmax.f32 %v704_v12, %v705_v30 }
 0x245   : > { %v2266_v10 = vpop.eup %1539  ;;  %1551 = vpow2.f32 %v823_v6  ;;  %v767_v12 = vsub.f32 %v2151_v27, %v2199_v35  ;;  %v851_v49 = vmul.f32 1.442695, %v747_v50  ;;  %v859_v6 = vmul.f32 1.442695, %v751_v57 }
 0x246   : > { %v902_v19 = vadd.f32 %v2245_v21, %v901_v1  ;;  %v2272_v18 = vpop.eup %1541  ;;  %1553 = vpow2.f32 %v815_v8  ;;  %v708_v27 = vsub.f32 %v1975_v13, %v2270_v15  ;;  %v863_v8 = vmul.f32 1.442695, %v753_v36  ;;  %v2629_v13 = vld [vmem:[#allocation14_spill] sm:$0xff] }
 0x247   : > { %v2277_v1 = vpop.eup %1543  ;;  %1555 = vpow2.f32 %v819_v46  ;;  %v891_v46 = vmul.f32 1.442695, %v767_v12  ;;  %v712_v54 = vsub.f32 %v2629_v13, %v2270_v15  ;;  %v763_v57 = vsub.f32 %v2105_v0, %v2199_v35 }
 0x248   : > { %v903_v32 = vadd.f32 %v2252_v26, %v902_v19  ;;  %v2281_v5 = vpop.eup %1545  ;;  %1557 = vpow2.f32 %v835_v63  ;;  %973 = vmatpush.msrb.mxu2 %v2277_v1  ;;  %v769_v19 = vsub.f32 %v2177_v38, %v2199_v35  ;;  %v765_v38 = vsub.f32 %v2124_v17, %v2199_v35 }
 0x249   : > { %v1548_v28 = vpop.eup %1547  ;;  %1559 = vpow2.f32 %v839_v23 }
 0x24a   : > { %v904_v34 = vadd.f32 %v2259_v48, %v903_v32  ;;  %v1550_v22 = vpop.eup %1549  ;;  %1561 = vpow2.f32 %v843_v61  ;;  %974 = vmatpush.msrb.mxu2 %v1548_v28  ;;  %v710_v32 = vsub.f32 %v1983_v16, %v2270_v15  ;;  %v773_v61 = vmul.f32 1.442695, %v708_v27 }
 0x24b   : > { %v1552_v40 = vpop.eup %1551  ;;  %1563 = vpow2.f32 %v847_v3 }
 0x24c   : > { %v905_v44 = vadd.f32 %v2266_v10, %v904_v34  ;;  %v1554_v11 = vpop.eup %1553  ;;  %1565 = vpow2.f32 %v851_v49  ;;  %975 = vmatpush.msrb.mxu2 %v1552_v40  ;;  %v895_v34 = vmul.f32 1.442695, %v769_v19  ;;  %v777_v3 = vmul.f32 1.442695, %v710_v32 }
 0x24d   : > { %v1556_v63 = vpop.eup %1555  ;;  %1567 = vpow2.f32 %v855_v43  ;;  %v761_v49 = vsub.f32 %v2095_v59, %v2199_v35  ;;  %v2631_v43 = vld [vmem:[#allocation16_spill] sm:$0xff]  ;;  %v883_v32 = vmul.f32 1.442695, %v763_v57 }
 0x24e   : > { %v906_v14 = vadd.f32 %v2272_v18, %v905_v44  ;;  %v2298_v23 = vpop.eup %1557  ;;  %1569 = vpow2.f32 %v859_v6  ;;  %976 = vmatpush.msrb.mxu2 %v1556_v63  ;;  %v2630_v44 = vld [vmem:[#allocation15_spill] sm:$0xff]  ;;  %v716_v6 = vsub.f32 %v2631_v43, %v2270_v15 }
 0x24f   : > { %v2302_v17 = vpop.eup %1559  ;;  %1571 = vpow2.f32 %v863_v8  ;;  %v714_v36 = vsub.f32 %v2630_v44, %v2270_v15  ;;  %v759_v8 = vsub.f32 %v2087_v55, %v2199_v35  ;;  %v879_v13 = vmul.f32 1.442695, %v761_v49 }
 0x250   : > { %v907_v30 = vadd.f32 %v2281_v5, %v906_v14  ;;  %v2306_v12 = vpop.eup %1561  ;;  %v887_v14 = vmul.f32 1.442695, %v765_v38  ;;  %1573 = vpow2.f32 %v891_v46  ;;  %977 = vmatpush.msrb.mxu2 %v1554_v11 }
 0x251   : > { %v2310_v0 = vpop.eup %1563  ;;  %1575 = vpow2.f32 %v895_v34  ;;  %v785_v46 = vmul.f32 1.442695, %v714_v36  ;;  %v757_v34 = vsub.f32 %v2079_v51, %v2199_v35  ;;  %v875_v44 = vmul.f32 1.442695, %v759_v8  ;;  %v2635_v8 = vld [vmem:[#allocation20_spill] sm:$0xff] }
 0x252   : > { %v908_v50 = vadd.f32 %v1550_v22, %v907_v30  ;;  %v781_v30 = vmul.f32 1.442695, %v712_v54  ;;  %v2314_v27 = vpop.eup %1565  ;;  %1577 = vpow2.f32 %v773_v61  ;;  %978 = vmatpush.msrb.mxu2 %v1550_v22  ;;  %v755_v22 = vsub.f32 %v2166_v25, %v2199_v35 }
 0x253   : > { %v2318_v59 = vpop.eup %1567  ;;  %1579 = vpow2.f32 %v777_v3  ;;  %v871_v3 = vmul.f32 1.442695, %v757_v34 }
 0x254   : > { %v909_v16 = vadd.f32 %v1554_v11, %v908_v50  ;;  %v2632_v11 = vld [vmem:[#allocation17_spill] sm:$0xff]  ;;  %1581 = vpow2.f32 %v887_v14  ;;  %979 = vmatpush.msrb.mxu2 %v2281_v5  ;;  %v2634_v5 = vld [vmem:[#allocation19_spill] sm:$0xff]  ;;  %v724_v14 = vsub.f32 %v2041_v33, %v2270_v15  ;;  %v726_v33 = vsub.f32 %v2635_v8, %v2270_v15 }
 0x255   : > { %v718_v38 = vsub.f32 %v2632_v11, %v2270_v15  ;;  %1583 = vpow2.f32 %v781_v30  ;;  %v722_v36 = vsub.f32 %v2634_v5, %v2270_v15 }
 0x256   : > { %v910_v19 = vadd.f32 %v1556_v63, %v909_v16  ;;  %v2322_v63 = vpop.eup %1569  ;;  %v789_v16 = vmul.f32 1.442695, %v716_v6  ;;  %1585 = vpow2.f32 %v883_v32  ;;  %980 = vmatpush.msrb.mxu2 %v2272_v18  ;;  %v805_v34 = vmul.f32 1.442695, %v724_v14 }
 0x257   : > { %v2327_v55 = vpop.eup %1571  ;;  %1587 = vpow2.f32 %v785_v46  ;;  %v793_v25 = vmul.f32 1.442695, %v718_v38  ;;  %v801_v11 = vmul.f32 1.442695, %v722_v36 }
 0x258   : > { %v911_v50 = vadd.f32 %v1552_v40, %v910_v19  ;;  %v2633_v40 = vld [vmem:[#allocation18_spill] sm:$0xff]  ;;  %v2333_v61 = vpop.eup %1573  ;;  %1589 = vpow2.f32 %v879_v13  ;;  %981 = vmatpush.msrb.mxu2 %v2266_v10  ;;  %v738_v19 = vsub.f32 %v2071_v47, %v2270_v15  ;;  %v728_v47 = vsub.f32 %v2051_v37, %v2270_v15 }
 0x259   : > { %v720_v57 = vsub.f32 %v2633_v40, %v2270_v15  ;;  %1591 = vpow2.f32 %v789_v16  ;;  %v730_v37 = vsub.f32 %v2055_v39, %v2270_v15  ;;  %v809_v16 = vmul.f32 1.442695, %v726_v33  ;;  %v2637_v39 = vld [vmem:[#allocation22_spill] sm:$0xff] }
 0x25a   : > { %v912_v54 = vadd.f32 %v1548_v28, %v911_v50  ;;  %v2337_v28 = vpop.eup %1575  ;;  %1593 = vpow2.f32 %v875_v44  ;;  %982 = vmatpush.msrb.mxu2 %v2259_v48  ;;  %v736_v50 = vsub.f32 %v2067_v45, %v2270_v15  ;;  %v2636_v45 = vld [vmem:[#allocation24_spill] sm:$0xff] }
 0x25b   : > { %v2341_v35 = vpop.eup %1577  ;;  %1014 = vmatpush.msrb.mxu3 %v2337_v28  ;;  %v797_v43 = vmul.f32 1.442695, %v720_v57  ;;  %1595 = vpow2.f32 %v793_v25 }
 0x25c   : > { %v913_v51 = vadd.f32 %v2277_v1, %v912_v54  ;;  %v2348_v18 = vpop.eup %1579  ;;  %v867_v1 = vmul.f32 1.442695, %v755_v22  ;;  %1597 = vpow2.f32 %v871_v3  ;;  %983 = vmatpush.msrb.mxu2 %v2252_v26  ;;  %v734_v54 = vsub.f32 %v2636_v45, %v2270_v15 }
 0x25d   : > { %v2352_v6 = vpop.eup %1581  ;;  %v936_v32 = vadd.f32 %v2348_v18, %v2341_v35  ;;  %1015 = vmatpush.msrb.mxu3 %v2333_v61  ;;  %1599 = vpow2.f32 %v797_v43  ;;  %v833_v22 = vmul.f32 1.442695, %v738_v19  ;;  %v829_v5 = vmul.f32 1.442695, %v736_v50 }
 0x25e   : > { %v914_v49 = vadd.f32 %v2298_v23, %v913_v51  ;;  %v2361_v10 = vpop.eup %1583  ;;  %1601 = vpow2.f32 %v867_v1  ;;  %984 = vmatpush.msrb.mxu2 %v2245_v21  ;;  %v732_v51 = vsub.f32 %v2637_v39, %v2270_v15  ;;  %v813_v3 = vmul.f32 1.442695, %v728_v47 }
 0x25f   : > { %v2367_v38 = vpop.eup %1585  ;;  %v937_v13 = vadd.f32 %v2361_v10, %v936_v32  ;;  %1016 = vmatpush.msrb.mxu3 %v2352_v6  ;;  %1603 = vpow2.f32 %v801_v11  ;;  %v825_v21 = vmul.f32 1.442695, %v734_v54  ;;  %v817_v43 = vmul.f32 1.442695, %v730_v37 }
 0x260   : > { %v915_v30 = vadd.f32 %v2302_v17, %v914_v49  ;;  %v2373_v48 = vpop.eup %1587  ;;  %1605 = vpow2.f32 %v805_v34  ;;  %985 = vmatpush.msrb.mxu2 %v2238_v41  ;;  %v821_v33 = vmul.f32 1.442695, %v732_v51 }
 0x261   : > { %v2379_v40 = vpop.eup %1589  ;;  %v938_v44 = vadd.f32 %v2373_v48, %v937_v13  ;;  %1017 = vmatpush.msrb.mxu3 %v2367_v38  ;;  %1607 = vpow2.f32 %v833_v22 }
 0x262   : > { %v916_v46 = vadd.f32 %v2306_v12, %v915_v30  ;;  %v2385_v26 = vpop.eup %1591  ;;  %1609 = vpow2.f32 %v809_v16  ;;  %986 = vmatpush.msrb.mxu2 %v2231_v31 }
 0x263   : > { %v1594_v36 = vpop.eup %1593  ;;  %v939_v49 = vadd.f32 %v2385_v26, %v938_v44  ;;  %1018 = vmatpush.msrb.mxu3 %v2379_v40  ;;  %1611 = vpow2.f32 %v829_v5  ;;  %v2639_v44 = vld [vmem:[#allocation26_spill] sm:$0xff] }
 0x264   : > { %v917_v57 = vadd.f32 %v2310_v0, %v916_v46  ;;  %v2393_v14 = vpop.eup %1595  ;;  %1613 = vpow2.f32 %v813_v3  ;;  %987 = vmatpush.msrb.mxu2 %v2223_v52  ;;  %v2638_v52 = vld [vmem:[#allocation25_spill] sm:$0xff]  ;;  %v742_v39 = vsub.f32 %v2639_v44, %v2270_v15 }
 0x265   : > { %v1598_v1 = vpop.eup %1597  ;;  %v940_v30 = vadd.f32 %v2393_v14, %v939_v49  ;;  %1019 = vmatpush.msrb.mxu3 %v1594_v36  ;;  %1615 = vpow2.f32 %v825_v21  ;;  %v740_v45 = vsub.f32 %v2638_v52, %v2270_v15  ;;  %v744_v49 = vsub.f32 %v2089_v56, %v2270_v15 }
 0x266   : > { %v918_v25 = vadd.f32 %v2314_v27, %v917_v57  ;;  %v2398_v8 = vpop.eup %1599  ;;  %1617 = vpow2.f32 %v817_v43  ;;  %988 = vmatpush.msrb.mxu2 %v2219_v24  ;;  %v770_v57 = vsub.f32 %v2196_v29, %v2270_v15  ;;  %v748_v56 = vsub.f32 %v2108_v2, %v2270_v15 }
 0x267   : > { %v1602_v32 = vpop.eup %1601  ;;  %v941_v47 = vadd.f32 %v2398_v8, %v940_v30  ;;  %1020 = vmatpush.msrb.mxu3 %v1598_v1  ;;  %1619 = vpow2.f32 %v821_v33  ;;  %v837_v21 = vmul.f32 1.442695, %v740_v45  ;;  %v2640_v30 = vld [vmem:[#allocation27_spill] sm:$0xff]  ;;  %v841_v33 = vmul.f32 1.442695, %v742_v39 }
 0x268   : > { %v919_v19 = vadd.f32 %v2318_v59, %v918_v25  ;;  %v2403_v50 = vpop.eup %1603  ;;  %v768_v25 = vsub.f32 %v2189_v60, %v2270_v15  ;;  %v746_v60 = vsub.f32 %v2640_v30, %v2270_v15  ;;  %v853_v45 = vmul.f32 1.442695, %v748_v56  ;;  %v1333_v30 = vld [vmem:[%s1883_s14 + $0x110] sm:$0xff]  ;;  %v1335_v56 = vld [vmem:[%s1883_s14 + $0x120] sm:$0xff] }
 0x269   : > { %v2405_v11 = vpop.eup %1605  ;;  %v942_v46 = vadd.f32 %v2403_v50, %v941_v47  ;;  %1021 = vmatpush.msrb.mxu3 %v1602_v32  ;;  %1621 = vpow2.f32 %v837_v21  ;;  %v2641_v47 = vld [vmem:[#allocation28_spill] sm:$0xff] }
 0x26a   : > { %v920_v41 = vadd.f32 %v2322_v63, %v919_v19  ;;  %v2410_v34 = vpop.eup %1607  ;;  %v766_v19 = vsub.f32 %v2168_v4, %v2270_v15 }
 0x26b   : > { %v1610_v13 = vpop.eup %1609  ;;  %v943_v54 = vadd.f32 %v2405_v11, %v942_v46  ;;  %1022 = vmatpush.msrb.mxu3 %v2327_v55  ;;  %1055 = vmatpush.msra.mxu2 %v2410_v34 }
 0x26c   : > { %v921_v31 = vadd.f32 %v2327_v55, %v920_v41  ;;  %v1612_v22 = vpop.eup %1611  ;;  %v845_v41 = vmul.f32 1.442695, %v744_v49  ;;  %v889_v46 = vmul.f32 1.442695, %v766_v19 }
 0x26d   : > { %v1614_v16 = vpop.eup %1613  ;;  %v944_v51 = vadd.f32 %v1610_v13, %v943_v54  ;;  %1023 = vmatpush.msrb.mxu3 %v2322_v63  ;;  %1056 = vmatpush.msra.mxu2 %v1612_v22  ;;  %v897_v63 = vmul.f32 1.442695, %v770_v57 }
 0x26e   : > { %v922_v37 = vadd.f32 %v1602_v32, %v921_v31  ;;  %v1616_v5 = vpop.eup %1615  ;;  %v893_v32 = vmul.f32 1.442695, %v768_v25  ;;  %v750_v31 = vsub.f32 %v2641_v47, %v2270_v15 }
 0x26f   : > { %v1618_v55 = vpop.eup %1617  ;;  %v945_v29 = vadd.f32 %v1614_v16, %v944_v51  ;;  %1024 = vmatpush.msrb.mxu3 %v2318_v59  ;;  %1057 = vmatpush.msra.mxu2 %v1616_v5  ;;  %v764_v59 = vsub.f32 %v2141_v42, %v2270_v15  ;;  %1623 = vpow2.f32 %v897_v63  ;;  %v849_v42 = vmul.f32 1.442695, %v746_v60  ;;  %v2481_v51 = vld [vmem:[%s1883_s14 + $0x100] sm:$0xff] }
 0x270   : > { %v923_v24 = vadd.f32 %v1598_v1, %v922_v37  ;;  %v1620_v1 = vpop.eup %1619  ;;  %1625 = vpow2.f32 %v841_v33  ;;  %989 = vmatmul.f32.vlgmr.msrb.gmra.mxu2 %v2481_v51 }
 0x271   : > { %1025 = vmatpush.msrb.mxu3 %v2314_v27  ;;  %1058 = vmatpush.msra.mxu2 %v1620_v1  ;;  %v762_v27 = vsub.f32 %v2118_v9, %v2270_v15  ;;  %v885_v52 = vmul.f32 1.442695, %v764_v59  ;;  %1627 = vpow2.f32 %v893_v32  ;;  %v2455_v57 = vpop.eup %1621  ;;  %v1336_v59 = vld [vmem:[%s1883_s14 + $0x128] sm:$0xff] }
 0x272   : > { %v924_v3 = vadd.f32 %v1594_v36, %v923_v24  ;;  %v946_v36 = vadd.f32 %v1618_v55, %v945_v29  ;;  %1629 = vpow2.f32 %v845_v41  ;;  %v1338_v41 = vld [vmem:[%s1883_s14 + $0x138] sm:$0xff] }
 0x273   : > { %1026 = vmatpush.msrb.mxu3 %v2310_v0  ;;  %1059 = vmatpush.msra.mxu2 %v1618_v55  ;;  %v752_v0 = vsub.f32 %v2154_v7, %v2270_v15  ;;  %v881_v7 = vmul.f32 1.442695, %v762_v27  ;;  %1631 = vpow2.f32 %v889_v46  ;;  %v1340_v27 = vld [vmem:[%s1883_s14 + $0x148] sm:$0xff]  ;;  %v1341_v46 = vld [vmem:[%s1883_s14 + $0x150] sm:$0xff] }
 0x274   : > { %v925_v43 = vadd.f32 %v2379_v40, %v924_v3  ;;  %v947_v40 = vadd.f32 %v1620_v1, %v946_v36  ;;  %1633 = vpow2.f32 %v849_v42  ;;  %v1343_v42 = vld [vmem:[%s1883_s14 + $0x160] sm:$0xff] }
 0x275   : > { %1027 = vmatpush.msrb.mxu3 %v2306_v12  ;;  %1060 = vmatpush.msra.mxu2 %v1614_v16  ;;  %v754_v12 = vsub.f32 %v2179_v20, %v2270_v15  ;;  %1635 = vpow2.f32 %v885_v52 }
 0x276   : > { %v926_v4 = vadd.f32 %v2367_v38, %v925_v43  ;;  %v948_v37 = vadd.f32 %v1616_v5, %v947_v40  ;;  %v760_v38 = vsub.f32 %v2101_v62, %v2270_v15  ;;  %1637 = vpow2.f32 %v853_v45  ;;  %v2484_v5 = vld [vmem:[%s1883_s14 + $0x108] sm:$0xff] }
 0x277   : > { %1028 = vmatpush.msrb.mxu3 %v2302_v17  ;;  %1061 = vmatpush.msra.mxu2 %v1610_v13  ;;  %v2463_v17 = vpop.eup %1623  ;;  %1639 = vpow2.f32 %v881_v7 }
 0x278   : > { %v927_v2 = vadd.f32 %v2352_v6, %v926_v4  ;;  %v949_v54 = vadd.f32 %v1612_v22, %v948_v37  ;;  %v758_v6 = vsub.f32 %v2093_v58, %v2270_v15  ;;  %v756_v58 = vsub.f32 %v2083_v53, %v2270_v15  ;;  %v2467_v13 = vpop.eup %1625  ;;  %992 = vmatmul.f32.gmra.mxu2 %v1333_v30  ;;  %v1337_v4 = vld [vmem:[%s1883_s14 + $0x130] sm:$0xff]  ;;  %v1344_v37 = vld [vmem:[%s1883_s14 + $0x168] sm:$0xff] }
 0x279   : > { %1029 = vmatpush.msrb.mxu3 %v2298_v23  ;;  %1062 = vmatpush.msra.mxu2 %v2405_v11  ;;  %v877_v20 = vmul.f32 1.442695, %v760_v38  ;;  %v2472_v23 = vpop.eup %1627  ;;  %v865_v53 = vmul.f32 1.442695, %v754_v12  ;;  %v1346_v38 = vld [vmem:[%s1883_s14 + $0x178] sm:$0xff] }
 0x27a   : > { %v928_v9 = vadd.f32 %v2333_v61, %v927_v2  ;;  %v857_v61 = vmul.f32 1.442695, %v750_v31  ;;  %v950_v22 = vadd.f32 %v2410_v34, %v949_v54  ;;  %v873_v11 = vmul.f32 1.442695, %v758_v6  ;;  %v2474_v34 = vpop.eup %1629  ;;  %1030 = vmatmul.f32.vlgmr.msrb.gmra.mxu3 %v2484_v5  ;;  %v1339_v31 = vld [vmem:[%s1883_s14 + $0x140] sm:$0xff]  ;;  %v1342_v2 = vld [vmem:[%s1883_s14 + $0x158] sm:$0xff] }
 0x27b   : > { %1096 = vmatpush.msra.mxu3 %v2463_v17  ;;  %1063 = vmatpush.msra.mxu2 %v2403_v50  ;;  %v1632_v24 = vpop.eup %1631  ;;  %v869_v44 = vmul.f32 1.442695, %v756_v58 }
 0x27c   : > { %v2458_v62 = vadd.f32 %v2337_v28, %v928_v9  ;;  %v861_v28 = vmul.f32 1.442695, %v752_v0  ;;  %v951_v16 = vadd.f32 %v2455_v57, %v950_v22  ;;  %1641 = vpow2.f32 %v857_v61  ;;  %v1634_v50 = vpop.eup %1633  ;;  %v1345_v0 = vld [vmem:[%s1883_s14 + $0x170] sm:$0xff] }
 0x27d   : > { %1097 = vmatpush.msra.mxu3 %v2472_v23  ;;  %1064 = vmatpush.msra.mxu2 %v2398_v8  ;;  %1643 = vpow2.f32 %v877_v20  ;;  %v1636_v25 = vpop.eup %1635 }
 0x27e   : > { %v952_v15 = vadd.f32 %v2467_v13, %v951_v16  ;;  %1645 = vpow2.f32 %v861_v28  ;;  %v1638_v8 = vpop.eup %1637  ;;  %v930_v52 = vrot.slane %v2458_v62, 4 }
 0x27f   : > { %1098 = vmatpush.msra.mxu3 %v1632_v24  ;;  %1065 = vmatpush.msra.mxu2 %v2393_v14  ;;  %1647 = vpow2.f32 %v873_v11  ;;  %v1640_v3 = vpop.eup %1639 }
 0x280   : > { %v953_v39 = vadd.f32 %v2474_v34, %v952_v15  ;;  %1649 = vpow2.f32 %v865_v53  ;;  %995 = vmatmul.f32.gmra.mxu2 %v1335_v56  ;;  %v931_v9 = vadd.f32 %v930_v52, %v2458_v62 }
 0x281   : > { %1099 = vmatpush.msra.mxu3 %v1636_v25  ;;  %1066 = vmatpush.msra.mxu2 %v2385_v26  ;;  %1651 = vpow2.f32 %v869_v44  ;;  %v1334_v26 = vld [vmem:[%s1883_s14 + $0x118] sm:$0xff] }
 0x282   : > { %v954_v55 = vadd.f32 %v1634_v50, %v953_v39  ;;  %v1642_v49 = vpop.eup %1641  ;;  %1033 = vmatmul.f32.gmra.mxu3 %v1334_v26  ;;  %v932_v45 = vrot.slane %v931_v9, 2 }
 0x283   : > { %1100 = vmatpush.msra.mxu3 %v1640_v3  ;;  %1067 = vmatpush.msra.mxu2 %v2373_v48  ;;  %v1644_v14 = vpop.eup %1643 }
 0x284   : > { %v955_v21 = vadd.f32 %v1638_v8, %v954_v55  ;;  %v1646_v29 = vpop.eup %1645  ;;  %v933_v54 = vadd.f32 %v932_v45, %v931_v9 }
 0x285   : > { %1101 = vmatpush.msra.mxu3 %v1644_v14  ;;  %1068 = vmatpush.msra.mxu2 %v2361_v10  ;;  %v1648_v19 = vpop.eup %1647 }
 0x286   : > { %v956_v1 = vadd.f32 %v1642_v49, %v955_v21  ;;  %v1650_v63 = vpop.eup %1649  ;;  %v934_v12 = vrot.slane %v933_v54, 1 }
 0x287   : > { %1102 = vmatpush.msra.mxu3 %v1648_v19  ;;  %1069 = vmatpush.msra.mxu2 %v2348_v18  ;;  %v1652_v60 = vpop.eup %1651 }
 0x288   : > { %v957_v43 = vadd.f32 %v1646_v29, %v956_v1  ;;  %998 = vmatmul.f32.gmra.mxu2 %v1337_v4  ;;  %v935_v6 = vadd.f32 %v934_v12, %v933_v54 }
 0x289   : > { %1103 = vmatpush.msra.mxu3 %v1652_v60  ;;  %1070 = vmatpush.msra.mxu2 %v2341_v35 }
 0x28a   : > { %v958_v48 = vadd.f32 %v1650_v63, %v957_v43  ;;  %1036 = vmatmul.f32.gmra.mxu3 %v1336_v59  ;;  %1653 = vrcp.f32 %v935_v6  ;;  %vm1142_vm2 = vweird.f32 %v935_v6  ;;  %v1146_v58 = vand.u32 2147483647, %v935_v6 }
 0x28b   : > { %1104 = vmatpush.msra.mxu3 %v1650_v63 }
 0x28c   : > { %v959_v33 = vadd.f32 %v1652_v60, %v958_v48  ;;  %vm1147_vm4 = vcmp.eq.f32.partialorder %v1146_v58, 8.507059e+37 }
 0x28d   : > { %1105 = vmatpush.msra.mxu3 %v1646_v29 }
 0x28e   : > { %v960_v10 = vadd.f32 %v1648_v19, %v959_v33 }
 0x28f   : > { %1106 = vmatpush.msra.mxu3 %v1642_v49 }
 0x290   : > { %v961_v36 = vadd.f32 %v1644_v14, %v960_v10  ;;  %1001 = vmatmul.f32.gmra.mxu2 %v1339_v31  ;;  %v1654_v7 = vpop.eup %1653 }
 0x291   : > { %1107 = vmatpush.msra.mxu3 %v1638_v8  ;;  %vm1143_vm1 = vweird.f32 %v1654_v7 }
 0x292   : > { %v962_v18 = vadd.f32 %v1640_v3, %v961_v36  ;;  %1039 = vmatmul.f32.gmra.mxu3 %v1338_v41  ;;  %vm1144_vm3 = vmor %vm1142_vm2, %vm1143_vm1 }
 0x293   : > { %1108 = vmatpush.msra.mxu3 %v1634_v50 }
 0x294   : > { %v963_v32 = vadd.f32 %v1636_v25, %v962_v18 }
 0x295   : > { %1109 = vmatpush.msra.mxu3 %v2474_v34 }
 0x296   : > { %v964_v35 = vadd.f32 %v1632_v24, %v963_v32 }
 0x297   : > { %1110 = vmatpush.msra.mxu3 %v2467_v13 }
 0x298   : > { %v965_v40 = vadd.f32 %v2472_v23, %v964_v35  ;;  %1004 = vmatmul.f32.gmra.mxu2 %v1341_v46 }
 0x299   : > { %1111 = vmatpush.msra.mxu3 %v2455_v57  ;;  %v1138_v57 = vmul.f32 %v1654_v7, %v935_v6 }
 0x29a   : > { %v2504_v47 = vadd.f32 %v2463_v17, %v965_v40  ;;  %1042 = vmatmul.f32.gmra.mxu3 %v1340_v27  ;;  %v1148_v17 = vand.u32 2147483648, %v935_v6 }
 0x29b   : > { %v1139_v61 = vsub.f32 1.0, %v1138_v57 }
 0x29c   : > { %v1149_v16 = vor.u32 1.1754944e-38, %v1148_v17  ;;  %v967_v50 = vrot.slane %v2504_v47, 4 }
 0x29d   : > { %v1140_v62 = vmul.f32 %v1654_v7, %v1139_v61 }
 0x29e   : > { %v968_v25 = vadd.f32 %v967_v50, %v2504_v47 }
 0x29f   : > { %v1141_v22 = vadd.f32 %v1654_v7, %v1140_v62 }
 0x2a0   : > { %1007 = vmatmul.f32.gmra.mxu2 %v1343_v42  ;;  %v969_v55 = vrot.slane %v968_v25, 2 }
 0x2a1   : > { %v1145_v20 = vsel %vm1144_vm3, %v1654_v7, %v1141_v22 }
 0x2a2   : > { %1045 = vmatmul.f32.gmra.mxu3 %v1342_v2  ;;  %v1150_v11 = vsel %vm1147_vm4, %v1149_v16, %v1145_v20  ;;  %v970_v14 = vadd.f32 %v969_v55, %v968_v25 }
 0x2a4   : > { %v971_v1 = vrot.slane %v970_v14, 1 }
 0x2a8   : > { %1010 = vmatmul.f32.gmra.mxu2 %v1345_v0 }
 0x2aa   : > { %1048 = vmatmul.f32.gmra.mxu3 %v1344_v37 }
 0x2b0   : > { %1071 = vmatmul.f32.vlgmr.msra.gmra.mxu2 %v2481_v51 }
 0x2b2   : > { %1051 = vmatmul.f32.gmra.mxu3 %v1346_v38 }
 0x2b8   : > { %1074 = vmatmul.f32.gmra.mxu2 %v1333_v30  ;;  %v972_v30 = vadd.f32 %v971_v1, %v970_v14 }
 0x2ba   : > { %1112 = vmatmul.f32.vlgmr.msra.gmra.mxu3 %v2484_v5  ;;  %1655 = vrcp.f32 %v972_v30  ;;  %vm1156_vm6 = vweird.f32 %v972_v30 }
 0x2c0   : > { %1077 = vmatmul.f32.gmra.mxu2 %v1335_v56  ;;  %v1656_v36 = vpop.eup %1655 }
 0x2c1   : > { %v1152_v56 = vmul.f32 %v1656_v36, %v972_v30  ;;  %vm1157_vm5 = vweird.f32 %v1656_v36 }
 0x2c2   : > { %1115 = vmatmul.f32.gmra.mxu3 %v1334_v26  ;;  %vm1158_vm7 = vmor %vm1156_vm6, %vm1157_vm5 }
 0x2c3   : > { %v1153_v35 = vsub.f32 1.0, %v1152_v56 }
 0x2c8   : > { %1080 = vmatmul.f32.gmra.mxu2 %v1337_v4 }
 0x2ca   : > { %1118 = vmatmul.f32.gmra.mxu3 %v1336_v59 }
 0x2d0   : > { %1083 = vmatmul.f32.gmra.mxu2 %v1339_v31 }
 0x2d2   : > { %1121 = vmatmul.f32.gmra.mxu3 %v1338_v41  ;;  %v1154_v41 = vmul.f32 %v1656_v36, %v1153_v35 }
 0x2d8   : > { %1086 = vmatmul.f32.gmra.mxu2 %v1341_v46  ;;  %v1155_v46 = vadd.f32 %v1656_v36, %v1154_v41 }
 0x2da   : > { %1124 = vmatmul.f32.gmra.mxu3 %v1340_v27 }
 0x2e0   : > { %1089 = vmatmul.f32.gmra.mxu2 %v1343_v42  ;;  %v1160_v42 = vand.u32 2147483647, %v972_v30 }
 0x2e2   : > { %1127 = vmatmul.f32.gmra.mxu3 %v1342_v2  ;;  %v1162_v2 = vand.u32 2147483648, %v972_v30  ;;  %vm1161_vm8 = vcmp.eq.f32.partialorder %v1160_v42, 8.507059e+37 }
 0x2e4   : > { %v1163_v52 = vor.u32 1.1754944e-38, %v1162_v2 }
 0x2e8   : > { %1092 = vmatmul.f32.gmra.mxu2 %v1345_v0 }
 0x2ea   : > { %1130 = vmatmul.f32.gmra.mxu3 %v1344_v37  ;;  %v1159_v37 = vsel %vm1158_vm7, %v1656_v36, %v1155_v46 }
 0x2eb   : > { %v1164_v45 = vsel %vm1161_vm8, %v1163_v52, %v1159_v37 }
 0x2f2   : > { %1133 = vmatmul.f32.gmra.mxu3 %v1346_v38 }
 0x2f3   : > { %v990_v13 = vpop.f32.mrf.mxu2 }
 0x2fb   : > { %v993_v53 = vpop.f32.mrf.mxu2 }
 0x2fd   : > { %v1031_v28 = vpop.f32.mrf.mxu3 }
 0x2fe   : > { %v1032_v23 = vadd.f32 %v1031_v28, %v990_v13 }
 0x300   : > { %v1165_v34 = vmul.f32 %v1150_v11, %v1032_v23 }
 0x302   : > { %1181 = vst [vmem:[%s2520_s19] sm:$0xff] %v1165_v34 }
 0x303   : > { %v996_v39 = vpop.f32.mrf.mxu2 }
 0x305   : > { %v1034_v15 = vpop.f32.mrf.mxu3 }
 0x306   : > { %v1035_v24 = vadd.f32 %v1034_v15, %v993_v53 }
 0x308   : > { %v1167_v44 = vmul.f32 %v1150_v11, %v1035_v24 }
 0x30a   : > { %1183 = vst [vmem:[%s2520_s19 + $0x10] sm:$0xff] %v1167_v44 }
 0x30b   : > { %v999_v3 = vpop.f32.mrf.mxu2 }
 0x30d   : > { %v1037_v51 = vpop.f32.mrf.mxu3 }
 0x30e   : > { %v1038_v5 = vadd.f32 %v1037_v51, %v996_v39 }
 0x310   : > { %v1169_v8 = vmul.f32 %v1150_v11, %v1038_v5 }
 0x312   : > { %1185 = vst [vmem:[%s2520_s19 + $0x20] sm:$0xff] %v1169_v8 }
 0x313   : > { %v1002_v19 = vpop.f32.mrf.mxu2 }
 0x315   : > { %v1040_v49 = vpop.f32.mrf.mxu3 }
 0x316   : > { %v1041_v21 = vadd.f32 %v1040_v49, %v999_v3 }
 0x318   : > { %v1171_v29 = vmul.f32 %v1150_v11, %v1041_v21 }
 0x31a   : > { %1187 = vst [vmem:[%s2520_s19 + $0x30] sm:$0xff] %v1171_v29 }
 0x31b   : > { %v1005_v60 = vpop.f32.mrf.mxu2 }
 0x31d   : > { %v1043_v63 = vpop.f32.mrf.mxu3 }
 0x31e   : > { %v1044_v43 = vadd.f32 %v1043_v63, %v1002_v19 }
 0x320   : > { %v1173_v26 = vmul.f32 %v1150_v11, %v1044_v43 }
 0x322   : > { %1189 = vst [vmem:[%s2520_s19 + $0x40] sm:$0xff] %v1173_v26 }
 0x323   : > { %v1008_v59 = vpop.f32.mrf.mxu2 }
 0x325   : > { %v1046_v48 = vpop.f32.mrf.mxu3 }
 0x326   : > { %v1047_v33 = vadd.f32 %v1046_v48, %v1005_v60 }
 0x328   : > { %v1175_v10 = vmul.f32 %v1150_v11, %v1047_v33 }
 0x32a   : > { %1191 = vst [vmem:[%s2520_s19 + $0x50] sm:$0xff] %v1175_v10 }
 0x32b   : > { %v1011_v40 = vpop.f32.mrf.mxu2 }
 0x32d   : > { %v1049_v18 = vpop.f32.mrf.mxu3 }
 0x32e   : > { %v1050_v32 = vadd.f32 %v1049_v18, %v1008_v59 }
 0x330   : > { %v1177_v4 = vmul.f32 %v1150_v11, %v1050_v32 }
 0x332   : > { %1193 = vst [vmem:[%s2520_s19 + $0x60] sm:$0xff] %v1177_v4 }
 0x333   : > { %v1072_v0 = vpop.f32.mrf.mxu2 }
 0x335   : > { %v1052_v47 = vpop.f32.mrf.mxu3 }
 0x336   : > { %v1053_v31 = vadd.f32 %v1052_v47, %v1011_v40 }
 0x338   : > { %v1179_v27 = vmul.f32 %v1150_v11, %v1053_v31 }
 0x33a   : > { %1195 = vst [vmem:[%s2520_s19 + $0x70] sm:$0xff] %v1179_v27 }
 0x33b   : > { %v1075_v12 = vpop.f32.mrf.mxu2 }
 0x33d   : > { %v1113_v38 = vpop.f32.mrf.mxu3 }
 0x33e   : > { %v1114_v9 = vadd.f32 %v1113_v38, %v1072_v0 }
 0x340   : > { %v1166_v54 = vmul.f32 %v1164_v45, %v1114_v9 }
 0x342   : > { %1182 = vst [vmem:[%s2520_s19 + $0x8] sm:$0xff] %v1166_v54 }
 0x343   : > { %v1078_v61 = vpop.f32.mrf.mxu2 }
 0x345   : > { %v1116_v6 = vpop.f32.mrf.mxu3 }
 0x346   : > { %v1117_v7 = vadd.f32 %v1116_v6, %v1075_v12 }
 0x348   : > { %v1168_v57 = vmul.f32 %v1164_v45, %v1117_v7 }
 0x34a   : > { %1184 = vst [vmem:[%s2520_s19 + $0x18] sm:$0xff] %v1168_v57 }
 0x34b   : > { %v1081_v58 = vpop.f32.mrf.mxu2 }
 0x34d   : > { %v1119_v62 = vpop.f32.mrf.mxu3 }
 0x34e   : > { %v1120_v22 = vadd.f32 %v1119_v62, %v1078_v61 }
 0x350   : > { %v1170_v17 = vmul.f32 %v1164_v45, %v1120_v22 }
 0x352   : > { %1186 = vst [vmem:[%s2520_s19 + $0x28] sm:$0xff] %v1170_v17 }
 0x353   : > { %v1084_v16 = vpop.f32.mrf.mxu2 }
 0x355   : > { %v1122_v20 = vpop.f32.mrf.mxu3 }
 0x356   : > { %v1123_v13 = vadd.f32 %v1122_v20, %v1081_v58 }
 0x358   : > { %v1172_v28 = vmul.f32 %v1164_v45, %v1123_v13 }
 0x35a   : > { %1188 = vst [vmem:[%s2520_s19 + $0x38] sm:$0xff] %v1172_v28 }
 0x35b   : > { %v1087_v53 = vpop.f32.mrf.mxu2 }
 0x35d   : > { %v1125_v23 = vpop.f32.mrf.mxu3 }
 0x35e   : > { %v1126_v11 = vadd.f32 %v1125_v23, %v1084_v16 }
 0x360   : > { %v1174_v34 = vmul.f32 %v1164_v45, %v1126_v11 }
 0x362   : > { %1190 = vst [vmem:[%s2520_s19 + $0x48] sm:$0xff] %v1174_v34 }
 0x363   : > { %v1090_v50 = vpop.f32.mrf.mxu2 }
 0x365   : > { %v1128_v15 = vpop.f32.mrf.mxu3 }
 0x366   : > { %v1129_v24 = vadd.f32 %v1128_v15, %v1087_v53 }
 0x368   : > { %v1176_v44 = vmul.f32 %v1164_v45, %v1129_v24 }
 0x36a   : > { %1192 = vst [vmem:[%s2520_s19 + $0x58] sm:$0xff] %v1176_v44 }
 0x36b   : > { %v1093_v25 = vpop.f32.mrf.mxu2 }
 0x36d   : > { %v1131_v39 = vpop.f32.mrf.mxu3 }
 0x36e   : > { %v1132_v51 = vadd.f32 %v1131_v39, %v1090_v50 }
 0x370   : > { %v1178_v5 = vmul.f32 %v1164_v45, %v1132_v51 }
 0x372   : > { %1194 = vst [vmem:[%s2520_s19 + $0x68] sm:$0xff] %v1178_v5 }
 0x375   : > { %v1134_v8 = vpop.f32.mrf.mxu3 }
 0x376   : > { %v1135_v55 = vadd.f32 %v1134_v8, %v1093_v25 }
 0x378   : > { %v1180_v3 = vmul.f32 %v1164_v45, %v1135_v55 }
 0x37a   : > { %1196 = vst [vmem:[%s2520_s19 + $0x78] sm:$0xff] %v1180_v3 }
 0x37b   : > { %1684 = shalt.err (!%p1681_p10)
}
 0x37c   : > { %s1763_s12 = smov 256   ;;  %s1764_s14 = smov 16  }
 0x37d   : > { %1445 = dma.vmem_to_hbm [thread:$0]  (%p1839_p9), %s1213_s29, 2048, %s1215_s9, %s1198_s10, %s1763_s12, %s1763_s12, %s1764_s14  }
 0x37e PF: > { %p1451_p11 = scmp.ge.s32.totalorder %s1755_s13, 2  ;;  %s1229_s16 = sand.u32 1, %s1727_s6  }
 0x37f   : > { %s1230_s19 = scalar_lea.sflag [#allocation4], %s1229_s16 }
 0x380   : > { %p1448_p13 = pnand %p1451_p11, %p1846_p12 }
 0x382   : > { %p1449_p0 = pneg %p1448_p13 }
 0x384   : > { %1722 = dma.done.wait (%p1449_p0), %s1230_s19, 2048  }
 0x385   : > { %1724 = vsyncadd (%p1449_p0), %s1230_s19, 4294965248  ;;  %s17_s13 = sadd.s32 1, %s1755_s13   ;;  %s2642_s10 = sld [smem:[#allocation11_spill]] }
 0x386   : > { %p14_p1 = scmp.ge.s32.totalorder %s17_s13, 6   ;;  %s2643_s21 = sld [smem:[#allocation12_spill]] }
 0x387   : > { %s2644_s12 = sld [smem:[#allocation13_spill]]  ;;  %s2645_s6 = smov %s1731_s7 }
 0x388   : > { %s2646_s7 = smov %s1735_s8  ;;  %s2647_s8 = smov %s1851_s26 }
 0x389   : > { %s2648_s9 = smov %s1747_s11  ;;  %16 = sbr.rel (!%p14_p1) target bundleno = 7 (0x7), region = 76 }
 0x38c   : > { %s2649_s11 = smov %s2643_s21 }
 0x38e   :  { %1236 = vsyncpa [#allocation3], 1 }
 0x38f   :  { %1238 = vsyncpa [#allocation3 + $0x1], 1 }
 0x390   :  { %1239 = vsyncpa [#allocation4], 1 }
 0x391   :  { %1241 = vsyncpa [#allocation4 + $0x1], 1 }

</bundles_post_ra>
